<compile_context>
chip_gen: v7x
topology: tpu7x:2x2x1
jax: 0.10.0
libtpu: 0.0.40
codegen_flags: <defaults>
</compile_context>

<pallas_src>
import numpy as np
import jax
import jax.numpy as jnp
from jax import lax
from jax.experimental import pallas as pl
from jax.experimental.pallas import tpu as pltpu


# ----------------------------------------------------------------------------
# Host-side packing helpers (pure numpy, zero kernel cost)
# ----------------------------------------------------------------------------
def _band3x3(wt, W):
    """(COUT, CIN, 3, 3) -> (3*W*CIN, W*COUT) block-banded matmul weights.

    Row block dy holds B_dy with B_dy[w_in*CIN+ci, w_out*COUT+co] =
    wt[co, ci, dy, w_in - w_out + 1] inside the +-1 band (zeros implement the
    horizontal 'same' padding)."""
    wt = np.asarray(wt, np.float32)
    cout, cin = wt.shape[0], wt.shape[1]
    kf = W * cin
    b = np.zeros((3 * kf, W * cout), np.float32)
    for dy in range(3):
        for w_out in range(W):
            for dx in range(3):
                w_in = w_out + dx - 1
                if 0 <= w_in < W:
                    b[dy * kf + w_in * cin: dy * kf + (w_in + 1) * cin,
                      w_out * cout: (w_out + 1) * cout] = wt[:, :, dy, dx].T
    return jnp.asarray(b)


def _band1x1(wt, W):
    """(COUT, CIN, 1, 1) -> (W*CIN, W*COUT) block-diagonal 1x1-conv weight."""
    wt = np.asarray(wt, np.float32)[:, :, 0, 0]
    cout, cin = wt.shape
    b = np.zeros((W * cin, W * cout), np.float32)
    for w in range(W):
        b[w * cin:(w + 1) * cin, w * cout:(w + 1) * cout] = wt.T
    return jnp.asarray(b)


def _shift_mats(N, H):
    """Sparse row-shift matrices implementing the vertical +-1 taps with
    zero 'same' padding at every image boundary (masking baked in)."""
    NH = N * H
    sup = np.zeros((NH, NH), np.float32)   # row r <- row r-1 (dy = 0)
    sdn = np.zeros((NH, NH), np.float32)   # row r <- row r+1 (dy = 2)
    for r in range(NH):
        if r % H != 0:
            sup[r, r - 1] = 1.0
        if r % H != H - 1:
            sdn[r, r + 1] = 1.0
    return jnp.asarray(sup), jnp.asarray(sdn)


def _group_mats(W, cout):
    """gsum: (W*COUT, COUT) sums the W lane-groups per channel.
       gexp: (COUT, W*COUT) broadcasts a per-channel vector back to lanes."""
    g = np.zeros((W * cout, cout), np.float32)
    eye = np.eye(cout, dtype=np.float32)
    for w in range(W):
        g[w * cout:(w + 1) * cout, :] = eye
    return jnp.asarray(g), jnp.asarray(g.T)


# ----------------------------------------------------------------------------
# Kernel
# ----------------------------------------------------------------------------
def _make_res_kernel(N, H, W, CIN, COUT, eps):
    NH = N * H
    KF1 = W * CIN            # contraction depth of conv1 / conv3
    KF2 = W * COUT           # contraction depth of conv2
    inv_cnt = 1.0 / float(N * H * W)

    def kernel(x_ref, w1_ref, w2_ref, w3_ref, sup_ref, sdn_ref,
               g1_ref, be1_ref, g2_ref, be2_ref, g3_ref, be3_ref,
               gsum_ref, gexp_ref, out_ref):
        f32 = jnp.float32
        x = x_ref[...]            # (NH, W*CIN)   lanes = w*CIN + ci
        sup = sup_ref[...]        # (NH, NH)
        sdn = sdn_ref[...]

        def conv3x3(y, w_ref, kf):
            # vertical taps via MXU shift matrices (padding/masking baked in)
            up = jnp.dot(sup, y, preferred_element_type=f32)
            dn = jnp.dot(sdn, y, preferred_element_type=f32)
            acc = jnp.dot(up, w_ref[0 * kf:1 * kf, :], preferred_element_type=f32)
            acc = acc + jnp.dot(y, w_ref[1 * kf:2 * kf, :], preferred_element_type=f32)
            acc = acc + jnp.dot(dn, w_ref[2 * kf:3 * kf, :], preferred_element_type=f32)
            return acc            # (NH, W*COUT)

        def bn_scale_shift(y, g_ref, be_ref):
            # single-pass training-mode BN statistics (biased variance)
            s1 = jnp.dot(jnp.sum(y, axis=0, keepdims=True), gsum_ref[...],
                         preferred_element_type=f32)              # (1, COUT)
            s2 = jnp.dot(jnp.sum(y * y, axis=0, keepdims=True), gsum_ref[...],
                         preferred_element_type=f32)              # (1, COUT)
            mean = s1 * inv_cnt
            var = s2 * inv_cnt - mean * mean
            sc = g_ref[...] * lax.rsqrt(var + eps)                # (1, COUT)
            sh = be_ref[...] - mean * sc
            # expand per-channel -> per-(w, c) interleaved lane vector (MXU)
            sc_f = jnp.dot(sc, gexp_ref[...], preferred_element_type=f32)
            sh_f = jnp.dot(sh, gexp_ref[...], preferred_element_type=f32)
            return sc_f, sh_f                                     # (1, W*COUT)

        # ---- conv1 (3x3) -> BN1 -> relu ------------------------------------
        c1 = conv3x3(x, w1_ref, KF1)
        sc1, sh1 = bn_scale_shift(c1, g1_ref, be1_ref)
        y1 = jnp.maximum(c1 * sc1 + sh1, 0.0)

        # ---- conv2 (3x3) -> BN2 --------------------------------------------
        c2 = conv3x3(y1, w2_ref, KF2)
        sc2, sh2 = bn_scale_shift(c2, g2_ref, be2_ref)

        # ---- conv3 (1x1 shortcut) -> BN3 -----------------------------------
        c3 = jnp.dot(x, w3_ref[...], preferred_element_type=f32)
        sc3, sh3 = bn_scale_shift(c3, g3_ref, be3_ref)

        # ---- residual add + final relu, one lane-dense store ---------------
        out_ref[...] = jnp.maximum((c2 * sc2 + sh2) + (c3 * sc3 + sh3),
                                   0.0).astype(out_ref.dtype)

    return kernel


# ----------------------------------------------------------------------------
# Public wrapper (NCHW in / NCHW out)
# ----------------------------------------------------------------------------
def res_forward(x_nchw, p, *, eps=1e-5):
    N, CIN, H, W = x_nchw.shape
    COUT = p["w1"].shape[0]
    NH = N * H

    # Fold W into the lane axis (channel-minor): rows = N*H, lanes = W*C.
    x = jnp.transpose(x_nchw, (0, 2, 3, 1)).reshape(NH, W * CIN).astype(jnp.float32)

    w1 = _band3x3(p["w1"], W)            # (3*W*CIN,  W*COUT)
    w2 = _band3x3(p["w2"], W)            # (3*W*COUT, W*COUT)
    w3 = _band1x1(p["w3"], W)            # (W*CIN,    W*COUT)
    sup, sdn = _shift_mats(N, H)         # (NH, NH)
    gsum, gexp = _group_mats(W, COUT)    # (W*COUT, COUT), (COUT, W*COUT)

    # NOTE: conv biases b1/b2/b3 are intentionally NOT passed: a per-channel
    # constant bias is exactly cancelled by training-mode BN mean subtraction.
    row = lambda v: jnp.asarray(v, jnp.float32).reshape(1, -1)
    args = (x, w1, w2, w3, sup, sdn,
            row(p["g1"]), row(p["be1"]),
            row(p["g2"]), row(p["be2"]),
            row(p["g3"]), row(p["be3"]),
            gsum, gexp)

    kernel = _make_res_kernel(N, H, W, CIN, COUT, eps)
    vmem = pl.BlockSpec(memory_space=pltpu.MemorySpace.VMEM)
    out = pl.pallas_call(
        kernel,
        out_shape=jax.ShapeDtypeStruct((NH, W * COUT), jnp.float32),
        in_specs=[vmem] * len(args),
        out_specs=vmem,
        compiler_params=pltpu.CompilerParams(vmem_limit_bytes=32 * 1024 * 1024),
    )(*args)

    # (N*H, W*COUT) -> NCHW
    return jnp.transpose(out.reshape(N, H, W, COUT), (0, 3, 1, 2))


# ----------------------------------------------------------------------------
# Parameters + pure-JAX reference (keeps the biases -> validates cancellation)
# ----------------------------------------------------------------------------
def init_params(key, cin, cout):
    ks = jax.random.split(key, 12)
    n = lambda k, shp, s: s * jax.random.normal(k, shp, jnp.float32)
    return {
        "w1": n(ks[0], (cout, cin, 3, 3), 0.2), "b1": n(ks[1], (cout,), 0.1),
        "w2": n(ks[2], (cout, cout, 3, 3), 0.2), "b2": n(ks[3], (cout,), 0.1),
        "w3": n(ks[4], (cout, cin, 1, 1), 0.2), "b3": n(ks[5], (cout,), 0.1),
        "g1": 1.0 + n(ks[6], (cout,), 0.1), "be1": n(ks[7], (cout,), 0.1),
        "g2": 1.0 + n(ks[8], (cout,), 0.1), "be2": n(ks[9], (cout,), 0.1),
        "g3": 1.0 + n(ks[10], (cout,), 0.1), "be3": n(ks[11], (cout,), 0.1),
    }


def res_reference(x, p, eps=1e-5):
    def conv(x, w, b, pad):
        y = lax.conv_general_dilated(
            x, w, (1, 1), [(pad, pad), (pad, pad)],
            dimension_numbers=("NCHW", "OIHW", "NCHW"))
        return y + b[None, :, None, None]

    def bn(y, g, be):
        m = jnp.mean(y, axis=(0, 2, 3), keepdims=True)
        v = jnp.mean((y - m) ** 2, axis=(0, 2, 3), keepdims=True)
        return (y - m) * (g[None, :, None, None] / jnp.sqrt(v + eps)) \
            + be[None, :, None, None]

    y = jax.nn.relu(bn(conv(x, p["w1"], p["b1"], 1), p["g1"], p["be1"]))
    y = bn(conv(y, p["w2"], p["b2"], 1), p["g2"], p["be2"])
    s = bn(conv(x, p["w3"], p["b3"], 0), p["g3"], p["be3"])
    return jax.nn.relu(y + s)


if __name__ == "__main__":
    key = jax.random.PRNGKey(0)
    kx, kp = jax.random.split(key)
    N, CIN, COUT, H, W = 2, 4, 8, 16, 16

    x = jax.random.normal(kx, (N, CIN, H, W), jnp.float32)
    params = init_params(kp, CIN, COUT)

    out = jax.block_until_ready(res_forward(x, params))
    ref = jax.block_until_ready(res_reference(x, params))

    assert out.shape == (N, COUT, H, W)
    max_err = float(jnp.max(jnp.abs(out - ref)))
    if max_err > 1e-3:
        raise AssertionError(f"mismatch vs reference, max abs err = {max_err}")
    print("KERNEL_OK")
</pallas_src>

<mosaic_0001>
module attributes {stable_mosaic.version = 11 : i64} {
  func.func @kernel(%arg0: memref<32x64xf32, #tpu.memory_space<vmem>>, %arg1: memref<192x128xf32, #tpu.memory_space<vmem>>, %arg2: memref<384x128xf32, #tpu.memory_space<vmem>>, %arg3: memref<64x128xf32, #tpu.memory_space<vmem>>, %arg4: memref<32x32xf32, #tpu.memory_space<vmem>>, %arg5: memref<32x32xf32, #tpu.memory_space<vmem>>, %arg6: memref<1x8xf32, #tpu.memory_space<vmem>>, %arg7: memref<1x8xf32, #tpu.memory_space<vmem>>, %arg8: memref<1x8xf32, #tpu.memory_space<vmem>>, %arg9: memref<1x8xf32, #tpu.memory_space<vmem>>, %arg10: memref<1x8xf32, #tpu.memory_space<vmem>>, %arg11: memref<1x8xf32, #tpu.memory_space<vmem>>, %arg12: memref<128x8xf32, #tpu.memory_space<vmem>>, %arg13: memref<8x128xf32, #tpu.memory_space<vmem>>, %arg14: memref<32x128xf32, #tpu.memory_space<vmem>>) attributes {dimension_semantics = [], scalar_prefetch = 0 : i64, scratch_operands = 0 : i64, tpu.core_type = #tpu.core_type<tc>} {
    %c0 = arith.constant 0 : index
    %c0_0 = arith.constant 0 : index
    %0 = vector.load %arg0[%c0, %c0_0] : memref<32x64xf32, #tpu.memory_space<vmem>>, vector<32x64xf32>
    %c0_1 = arith.constant 0 : index
    %c0_2 = arith.constant 0 : index
    %1 = vector.load %arg4[%c0_1, %c0_2] : memref<32x32xf32, #tpu.memory_space<vmem>>, vector<32x32xf32>
    %c0_3 = arith.constant 0 : index
    %c0_4 = arith.constant 0 : index
    %2 = vector.load %arg5[%c0_3, %c0_4] : memref<32x32xf32, #tpu.memory_space<vmem>>, vector<32x32xf32>
    %cst = arith.constant dense<0.000000e+00> : vector<32x64xf32>
    %3 = tpu.matmul %1, %0, %cst {dimension_numbers = #tpu.dot_dimension_numbers<[1], [0], [0], [1], [0, 0, 1, 1], [], []>} : vector<32x32xf32>, vector<32x64xf32>, vector<32x64xf32> -> vector<32x64xf32>
    %cst_5 = arith.constant dense<0.000000e+00> : vector<32x64xf32>
    %4 = tpu.matmul %2, %0, %cst_5 {dimension_numbers = #tpu.dot_dimension_numbers<[1], [0], [0], [1], [0, 0, 1, 1], [], []>} : vector<32x32xf32>, vector<32x64xf32>, vector<32x64xf32> -> vector<32x64xf32>
    %c0_6 = arith.constant 0 : index
    %c0_7 = arith.constant 0 : index
    %5 = vector.load %arg1[%c0_6, %c0_7] : memref<192x128xf32, #tpu.memory_space<vmem>>, vector<64x128xf32>
    %cst_8 = arith.constant dense<0.000000e+00> : vector<32x128xf32>
    %6 = tpu.matmul %3, %5, %cst_8 {dimension_numbers = #tpu.dot_dimension_numbers<[1], [0], [0], [1], [0, 0, 1, 1], [], []>} : vector<32x64xf32>, vector<64x128xf32>, vector<32x128xf32> -> vector<32x128xf32>
    %c64 = arith.constant 64 : index
    %c0_9 = arith.constant 0 : index
    %7 = vector.load %arg1[%c64, %c0_9] : memref<192x128xf32, #tpu.memory_space<vmem>>, vector<64x128xf32>
    %cst_10 = arith.constant dense<0.000000e+00> : vector<32x128xf32>
    %8 = tpu.matmul %0, %7, %cst_10 {dimension_numbers = #tpu.dot_dimension_numbers<[1], [0], [0], [1], [0, 0, 1, 1], [], []>} : vector<32x64xf32>, vector<64x128xf32>, vector<32x128xf32> -> vector<32x128xf32>
    %9 = arith.addf %6, %8 : vector<32x128xf32>
    %c128 = arith.constant 128 : index
    %c0_11 = arith.constant 0 : index
    %10 = vector.load %arg1[%c128, %c0_11] : memref<192x128xf32, #tpu.memory_space<vmem>>, vector<64x128xf32>
    %cst_12 = arith.constant dense<0.000000e+00> : vector<32x128xf32>
    %11 = tpu.matmul %4, %10, %cst_12 {dimension_numbers = #tpu.dot_dimension_numbers<[1], [0], [0], [1], [0, 0, 1, 1], [], []>} : vector<32x64xf32>, vector<64x128xf32>, vector<32x128xf32> -> vector<32x128xf32>
    %12 = arith.addf %9, %11 : vector<32x128xf32>
    %cst_13 = arith.constant dense<0.000000e+00> : vector<128xf32>
    %13 = vector.multi_reduction <add>, %12, %cst_13 [0] : vector<32x128xf32> to vector<128xf32>
    %14 = vector.shape_cast %13 : vector<128xf32> to vector<1x128xf32>
    %c0_14 = arith.constant 0 : index
    %c0_15 = arith.constant 0 : index
    %15 = vector.load %arg12[%c0_14, %c0_15] : memref<128x8xf32, #tpu.memory_space<vmem>>, vector<128x8xf32>
    %cst_16 = arith.constant dense<0.000000e+00> : vector<1x8xf32>
    %16 = tpu.matmul %14, %15, %cst_16 {dimension_numbers = #tpu.dot_dimension_numbers<[1], [0], [0], [1], [0, 0, 1, 1], [], []>} : vector<1x128xf32>, vector<128x8xf32>, vector<1x8xf32> -> vector<1x8xf32>
    %17 = arith.mulf %12, %12 : vector<32x128xf32>
    %cst_17 = arith.constant dense<0.000000e+00> : vector<128xf32>
    %18 = vector.multi_reduction <add>, %17, %cst_17 [0] : vector<32x128xf32> to vector<128xf32>
    %19 = vector.shape_cast %18 : vector<128xf32> to vector<1x128xf32>
    %c0_18 = arith.constant 0 : index
    %c0_19 = arith.constant 0 : index
    %20 = vector.load %arg12[%c0_18, %c0_19] : memref<128x8xf32, #tpu.memory_space<vmem>>, vector<128x8xf32>
    %cst_20 = arith.constant dense<0.000000e+00> : vector<1x8xf32>
    %21 = tpu.matmul %19, %20, %cst_20 {dimension_numbers = #tpu.dot_dimension_numbers<[1], [0], [0], [1], [0, 0, 1, 1], [], []>} : vector<1x128xf32>, vector<128x8xf32>, vector<1x8xf32> -> vector<1x8xf32>
    %cst_21 = arith.constant 0.001953125 : f32
    %22 = vector.broadcast %cst_21 : f32 to vector<1x8xf32>
    %23 = arith.mulf %16, %22 : vector<1x8xf32>
    %cst_22 = arith.constant 0.001953125 : f32
    %24 = vector.broadcast %cst_22 : f32 to vector<1x8xf32>
    %25 = arith.mulf %21, %24 : vector<1x8xf32>
    %26 = arith.mulf %23, %23 : vector<1x8xf32>
    %27 = arith.subf %25, %26 : vector<1x8xf32>
    %c0_23 = arith.constant 0 : index
    %c0_24 = arith.constant 0 : index
    %28 = vector.load %arg6[%c0_23, %c0_24] : memref<1x8xf32, #tpu.memory_space<vmem>>, vector<1x8xf32>
    %cst_25 = arith.constant 9.99999974E-6 : f32
    %29 = vector.broadcast %cst_25 : f32 to vector<1x8xf32>
    %30 = arith.addf %27, %29 : vector<1x8xf32>
    %31 = math.rsqrt %30 : vector<1x8xf32>
    %32 = arith.mulf %28, %31 : vector<1x8xf32>
    %c0_26 = arith.constant 0 : index
    %c0_27 = arith.constant 0 : index
    %33 = vector.load %arg7[%c0_26, %c0_27] : memref<1x8xf32, #tpu.memory_space<vmem>>, vector<1x8xf32>
    %34 = arith.mulf %23, %32 : vector<1x8xf32>
    %35 = arith.subf %33, %34 : vector<1x8xf32>
    %c0_28 = arith.constant 0 : index
    %c0_29 = arith.constant 0 : index
    %36 = vector.load %arg13[%c0_28, %c0_29] : memref<8x128xf32, #tpu.memory_space<vmem>>, vector<8x128xf32>
    %cst_30 = arith.constant dense<0.000000e+00> : vector<1x128xf32>
    %37 = tpu.matmul %32, %36, %cst_30 {dimension_numbers = #tpu.dot_dimension_numbers<[1], [0], [0], [1], [0, 0, 1, 1], [], []>} : vector<1x8xf32>, vector<8x128xf32>, vector<1x128xf32> -> vector<1x128xf32>
    %c0_31 = arith.constant 0 : index
    %c0_32 = arith.constant 0 : index
    %38 = vector.load %arg13[%c0_31, %c0_32] : memref<8x128xf32, #tpu.memory_space<vmem>>, vector<8x128xf32>
    %cst_33 = arith.constant dense<0.000000e+00> : vector<1x128xf32>
    %39 = tpu.matmul %35, %38, %cst_33 {dimension_numbers = #tpu.dot_dimension_numbers<[1], [0], [0], [1], [0, 0, 1, 1], [], []>} : vector<1x8xf32>, vector<8x128xf32>, vector<1x128xf32> -> vector<1x128xf32>
    %40 = vector.broadcast %37 : vector<1x128xf32> to vector<32x128xf32>
    %41 = arith.mulf %12, %40 : vector<32x128xf32>
    %42 = vector.broadcast %39 : vector<1x128xf32> to vector<32x128xf32>
    %43 = arith.addf %41, %42 : vector<32x128xf32>
    %cst_34 = arith.constant 0.000000e+00 : f32
    %44 = vector.broadcast %cst_34 : f32 to vector<32x128xf32>
    %45 = arith.maximumf %43, %44 : vector<32x128xf32>
    %cst_35 = arith.constant dense<0.000000e+00> : vector<32x128xf32>
    %46 = tpu.matmul %1, %45, %cst_35 {dimension_numbers = #tpu.dot_dimension_numbers<[1], [0], [0], [1], [0, 0, 1, 1], [], []>} : vector<32x32xf32>, vector<32x128xf32>, vector<32x128xf32> -> vector<32x128xf32>
    %cst_36 = arith.constant dense<0.000000e+00> : vector<32x128xf32>
    %47 = tpu.matmul %2, %45, %cst_36 {dimension_numbers = #tpu.dot_dimension_numbers<[1], [0], [0], [1], [0, 0, 1, 1], [], []>} : vector<32x32xf32>, vector<32x128xf32>, vector<32x128xf32> -> vector<32x128xf32>
    %c0_37 = arith.constant 0 : index
    %c0_38 = arith.constant 0 : index
    %48 = vector.load %arg2[%c0_37, %c0_38] : memref<384x128xf32, #tpu.memory_space<vmem>>, vector<128x128xf32>
    %cst_39 = arith.constant dense<0.000000e+00> : vector<32x128xf32>
    %49 = tpu.matmul %46, %48, %cst_39 {dimension_numbers = #tpu.dot_dimension_numbers<[1], [0], [0], [1], [0, 0, 1, 1], [], []>} : vector<32x128xf32>, vector<128x128xf32>, vector<32x128xf32> -> vector<32x128xf32>
    %c128_40 = arith.constant 128 : index
    %c0_41 = arith.constant 0 : index
    %50 = vector.load %arg2[%c128_40, %c0_41] : memref<384x128xf32, #tpu.memory_space<vmem>>, vector<128x128xf32>
    %cst_42 = arith.constant dense<0.000000e+00> : vector<32x128xf32>
    %51 = tpu.matmul %45, %50, %cst_42 {dimension_numbers = #tpu.dot_dimension_numbers<[1], [0], [0], [1], [0, 0, 1, 1], [], []>} : vector<32x128xf32>, vector<128x128xf32>, vector<32x128xf32> -> vector<32x128xf32>
    %52 = arith.addf %49, %51 : vector<32x128xf32>
    %c256 = arith.constant 256 : index
    %c0_43 = arith.constant 0 : index
    %53 = vector.load %arg2[%c256, %c0_43] : memref<384x128xf32, #tpu.memory_space<vmem>>, vector<128x128xf32>
    %cst_44 = arith.constant dense<0.000000e+00> : vector<32x128xf32>
    %54 = tpu.matmul %47, %53, %cst_44 {dimension_numbers = #tpu.dot_dimension_numbers<[1], [0], [0], [1], [0, 0, 1, 1], [], []>} : vector<32x128xf32>, vector<128x128xf32>, vector<32x128xf32> -> vector<32x128xf32>
    %55 = arith.addf %52, %54 : vector<32x128xf32>
    %cst_45 = arith.constant dense<0.000000e+00> : vector<128xf32>
    %56 = vector.multi_reduction <add>, %55, %cst_45 [0] : vector<32x128xf32> to vector<128xf32>
    %57 = vector.shape_cast %56 : vector<128xf32> to vector<1x128xf32>
    %c0_46 = arith.constant 0 : index
    %c0_47 = arith.constant 0 : index
    %58 = vector.load %arg12[%c0_46, %c0_47] : memref<128x8xf32, #tpu.memory_space<vmem>>, vector<128x8xf32>
    %cst_48 = arith.constant dense<0.000000e+00> : vector<1x8xf32>
    %59 = tpu.matmul %57, %58, %cst_48 {dimension_numbers = #tpu.dot_dimension_numbers<[1], [0], [0], [1], [0, 0, 1, 1], [], []>} : vector<1x128xf32>, vector<128x8xf32>, vector<1x8xf32> -> vector<1x8xf32>
    %60 = arith.mulf %55, %55 : vector<32x128xf32>
    %cst_49 = arith.constant dense<0.000000e+00> : vector<128xf32>
    %61 = vector.multi_reduction <add>, %60, %cst_49 [0] : vector<32x128xf32> to vector<128xf32>
    %62 = vector.shape_cast %61 : vector<128xf32> to vector<1x128xf32>
    %c0_50 = arith.constant 0 : index
    %c0_51 = arith.constant 0 : index
    %63 = vector.load %arg12[%c0_50, %c0_51] : memref<128x8xf32, #tpu.memory_space<vmem>>, vector<128x8xf32>
    %cst_52 = arith.constant dense<0.000000e+00> : vector<1x8xf32>
    %64 = tpu.matmul %62, %63, %cst_52 {dimension_numbers = #tpu.dot_dimension_numbers<[1], [0], [0], [1], [0, 0, 1, 1], [], []>} : vector<1x128xf32>, vector<128x8xf32>, vector<1x8xf32> -> vector<1x8xf32>
    %cst_53 = arith.constant 0.001953125 : f32
    %65 = vector.broadcast %cst_53 : f32 to vector<1x8xf32>
    %66 = arith.mulf %59, %65 : vector<1x8xf32>
    %cst_54 = arith.constant 0.001953125 : f32
    %67 = vector.broadcast %cst_54 : f32 to vector<1x8xf32>
    %68 = arith.mulf %64, %67 : vector<1x8xf32>
    %69 = arith.mulf %66, %66 : vector<1x8xf32>
    %70 = arith.subf %68, %69 : vector<1x8xf32>
    %c0_55 = arith.constant 0 : index
    %c0_56 = arith.constant 0 : index
    %71 = vector.load %arg8[%c0_55, %c0_56] : memref<1x8xf32, #tpu.memory_space<vmem>>, vector<1x8xf32>
    %cst_57 = arith.constant 9.99999974E-6 : f32
    %72 = vector.broadcast %cst_57 : f32 to vector<1x8xf32>
    %73 = arith.addf %70, %72 : vector<1x8xf32>
    %74 = math.rsqrt %73 : vector<1x8xf32>
    %75 = arith.mulf %71, %74 : vector<1x8xf32>
    %c0_58 = arith.constant 0 : index
    %c0_59 = arith.constant 0 : index
    %76 = vector.load %arg9[%c0_58, %c0_59] : memref<1x8xf32, #tpu.memory_space<vmem>>, vector<1x8xf32>
    %77 = arith.mulf %66, %75 : vector<1x8xf32>
    %78 = arith.subf %76, %77 : vector<1x8xf32>
    %c0_60 = arith.constant 0 : index
    %c0_61 = arith.constant 0 : index
    %79 = vector.load %arg13[%c0_60, %c0_61] : memref<8x128xf32, #tpu.memory_space<vmem>>, vector<8x128xf32>
    %cst_62 = arith.constant dense<0.000000e+00> : vector<1x128xf32>
    %80 = tpu.matmul %75, %79, %cst_62 {dimension_numbers = #tpu.dot_dimension_numbers<[1], [0], [0], [1], [0, 0, 1, 1], [], []>} : vector<1x8xf32>, vector<8x128xf32>, vector<1x128xf32> -> vector<1x128xf32>
    %c0_63 = arith.constant 0 : index
    %c0_64 = arith.constant 0 : index
    %81 = vector.load %arg13[%c0_63, %c0_64] : memref<8x128xf32, #tpu.memory_space<vmem>>, vector<8x128xf32>
    %cst_65 = arith.constant dense<0.000000e+00> : vector<1x128xf32>
    %82 = tpu.matmul %78, %81, %cst_65 {dimension_numbers = #tpu.dot_dimension_numbers<[1], [0], [0], [1], [0, 0, 1, 1], [], []>} : vector<1x8xf32>, vector<8x128xf32>, vector<1x128xf32> -> vector<1x128xf32>
    %c0_66 = arith.constant 0 : index
    %c0_67 = arith.constant 0 : index
    %83 = vector.load %arg3[%c0_66, %c0_67] : memref<64x128xf32, #tpu.memory_space<vmem>>, vector<64x128xf32>
    %cst_68 = arith.constant dense<0.000000e+00> : vector<32x128xf32>
    %84 = tpu.matmul %0, %83, %cst_68 {dimension_numbers = #tpu.dot_dimension_numbers<[1], [0], [0], [1], [0, 0, 1, 1], [], []>} : vector<32x64xf32>, vector<64x128xf32>, vector<32x128xf32> -> vector<32x128xf32>
    %cst_69 = arith.constant dense<0.000000e+00> : vector<128xf32>
    %85 = vector.multi_reduction <add>, %84, %cst_69 [0] : vector<32x128xf32> to vector<128xf32>
    %86 = vector.shape_cast %85 : vector<128xf32> to vector<1x128xf32>
    %c0_70 = arith.constant 0 : index
    %c0_71 = arith.constant 0 : index
    %87 = vector.load %arg12[%c0_70, %c0_71] : memref<128x8xf32, #tpu.memory_space<vmem>>, vector<128x8xf32>
    %cst_72 = arith.constant dense<0.000000e+00> : vector<1x8xf32>
    %88 = tpu.matmul %86, %87, %cst_72 {dimension_numbers = #tpu.dot_dimension_numbers<[1], [0], [0], [1], [0, 0, 1, 1], [], []>} : vector<1x128xf32>, vector<128x8xf32>, vector<1x8xf32> -> vector<1x8xf32>
    %89 = arith.mulf %84, %84 : vector<32x128xf32>
    %cst_73 = arith.constant dense<0.000000e+00> : vector<128xf32>
    %90 = vector.multi_reduction <add>, %89, %cst_73 [0] : vector<32x128xf32> to vector<128xf32>
    %91 = vector.shape_cast %90 : vector<128xf32> to vector<1x128xf32>
    %c0_74 = arith.constant 0 : index
    %c0_75 = arith.constant 0 : index
    %92 = vector.load %arg12[%c0_74, %c0_75] : memref<128x8xf32, #tpu.memory_space<vmem>>, vector<128x8xf32>
    %cst_76 = arith.constant dense<0.000000e+00> : vector<1x8xf32>
    %93 = tpu.matmul %91, %92, %cst_76 {dimension_numbers = #tpu.dot_dimension_numbers<[1], [0], [0], [1], [0, 0, 1, 1], [], []>} : vector<1x128xf32>, vector<128x8xf32>, vector<1x8xf32> -> vector<1x8xf32>
    %cst_77 = arith.constant 0.001953125 : f32
    %94 = vector.broadcast %cst_77 : f32 to vector<1x8xf32>
    %95 = arith.mulf %88, %94 : vector<1x8xf32>
    %cst_78 = arith.constant 0.001953125 : f32
    %96 = vector.broadcast %cst_78 : f32 to vector<1x8xf32>
    %97 = arith.mulf %93, %96 : vector<1x8xf32>
    %98 = arith.mulf %95, %95 : vector<1x8xf32>
    %99 = arith.subf %97, %98 : vector<1x8xf32>
    %c0_79 = arith.constant 0 : index
    %c0_80 = arith.constant 0 : index
    %100 = vector.load %arg10[%c0_79, %c0_80] : memref<1x8xf32, #tpu.memory_space<vmem>>, vector<1x8xf32>
    %cst_81 = arith.constant 9.99999974E-6 : f32
    %101 = vector.broadcast %cst_81 : f32 to vector<1x8xf32>
    %102 = arith.addf %99, %101 : vector<1x8xf32>
    %103 = math.rsqrt %102 : vector<1x8xf32>
    %104 = arith.mulf %100, %103 : vector<1x8xf32>
    %c0_82 = arith.constant 0 : index
    %c0_83 = arith.constant 0 : index
    %105 = vector.load %arg11[%c0_82, %c0_83] : memref<1x8xf32, #tpu.memory_space<vmem>>, vector<1x8xf32>
    %106 = arith.mulf %95, %104 : vector<1x8xf32>
    %107 = arith.subf %105, %106 : vector<1x8xf32>
    %c0_84 = arith.constant 0 : index
    %c0_85 = arith.constant 0 : index
    %108 = vector.load %arg13[%c0_84, %c0_85] : memref<8x128xf32, #tpu.memory_space<vmem>>, vector<8x128xf32>
    %cst_86 = arith.constant dense<0.000000e+00> : vector<1x128xf32>
    %109 = tpu.matmul %104, %108, %cst_86 {dimension_numbers = #tpu.dot_dimension_numbers<[1], [0], [0], [1], [0, 0, 1, 1], [], []>} : vector<1x8xf32>, vector<8x128xf32>, vector<1x128xf32> -> vector<1x128xf32>
    %c0_87 = arith.constant 0 : index
    %c0_88 = arith.constant 0 : index
    %110 = vector.load %arg13[%c0_87, %c0_88] : memref<8x128xf32, #tpu.memory_space<vmem>>, vector<8x128xf32>
    %cst_89 = arith.constant dense<0.000000e+00> : vector<1x128xf32>
    %111 = tpu.matmul %107, %110, %cst_89 {dimension_numbers = #tpu.dot_dimension_numbers<[1], [0], [0], [1], [0, 0, 1, 1], [], []>} : vector<1x8xf32>, vector<8x128xf32>, vector<1x128xf32> -> vector<1x128xf32>
    %112 = vector.broadcast %80 : vector<1x128xf32> to vector<32x128xf32>
    %113 = arith.mulf %55, %112 : vector<32x128xf32>
    %114 = vector.broadcast %82 : vector<1x128xf32> to vector<32x128xf32>
    %115 = arith.addf %113, %114 : vector<32x128xf32>
    %116 = vector.broadcast %109 : vector<1x128xf32> to vector<32x128xf32>
    %117 = arith.mulf %84, %116 : vector<32x128xf32>
    %118 = vector.broadcast %111 : vector<1x128xf32> to vector<32x128xf32>
    %119 = arith.addf %117, %118 : vector<32x128xf32>
    %120 = arith.addf %115, %119 : vector<32x128xf32>
    %cst_90 = arith.constant 0.000000e+00 : f32
    %121 = vector.broadcast %cst_90 : f32 to vector<32x128xf32>
    %122 = arith.maximumf %120, %121 : vector<32x128xf32>
    %c0_91 = arith.constant 0 : index
    %c0_92 = arith.constant 0 : index
    %123 = vector.load %arg14[%c0_91, %c0_92] : memref<32x128xf32, #tpu.memory_space<vmem>>, vector<32x128xf32>
    tpu.vector_store %arg14[%c0_91, %c0_92], %122 {strides = array<i32>} : memref<32x128xf32, #tpu.memory_space<vmem>>, vector<32x128xf32>,
    return
  }
}

</mosaic_0001>

<bundles_post_ra>
// kernel: tpu_custom_call.1
= control target key start
LH: loop header
LB: loop body
LE: loop exit
PB: predicated region body
PF: predicated region fallthrough
CT: control target
= control target key end

     0   :  { %19 = vsyncpa [#allocation3], 0  ;;  %s4091_s0 = inlined_call_operand.vmem [shape: f32[32,64], index: 0, kind: input, shape index: {}]   ;;  %s4092_s1 = inlined_call_operand.hbm [shape: f32[192,128], index: 1, kind: input, shape index: {}]   ;;  %s4093_s2 = inlined_call_operand.hbm [shape: f32[384,128], index: 2, kind: input, shape index: {}]   ;;  %s4094_s3 = inlined_call_operand.vmem [shape: f32[64,128], index: 3, kind: input, shape index: {}]   ;;  %s4095_s4 = inlined_call_operand.vmem [shape: f32[32,32], index: 4, kind: input, shape index: {}]   ;;  %s4096_s5 = inlined_call_operand.hbm [shape: f32[32,32], index: 5, kind: input, shape index: {}]   ;;  %s4097_s6 = inlined_call_operand.vmem [shape: f32[1,8], index: 6, kind: input, shape index: {}]   ;;  %s4098_s7 = inlined_call_operand.vmem [shape: f32[1,8], index: 7, kind: input, shape index: {}]   ;;  %s4099_s8 = inlined_call_operand.vmem [shape: f32[1,8], index: 8, kind: input, shape index: {}]   ;;  %s4100_s9 = inlined_call_operand.vmem [shape: f32[1,8], index: 9, kind: input, shape index: {}]   ;;  %s4101_s10 = inlined_call_operand.vmem [shape: f32[1,8], index: 10, kind: input, shape index: {}]   ;;  %s4102_s11 = inlined_call_operand.vmem [shape: f32[1,8], index: 11, kind: input, shape index: {}]   ;;  %s4103_s12 = inlined_call_operand.vmem [shape: f32[128,8], index: 12, kind: input, shape index: {}]   ;;  %s4104_s13 = inlined_call_operand.vmem [shape: f32[8,128], index: 13, kind: input, shape index: {}]   ;;  %s4105_s14 = inlined_call_operand.hbm [shape: f32[32,128], index: 14, kind: output, shape index: {}]  }
   0x1   :  { %20 = vsyncpa [#allocation6], 0 }
   0x2   :  { %21 = vsyncpa [#allocation4], 0  ;;  %s3498_s29 = smov [#allocation5]   ;;  %s3499_s15 = smov [#allocation2]  }
   0x3   :  { %s41_s30 = sshll.u32 %s3498_s29, 4  ;;  %s29_s16 = sshll.u32 %s3499_s15, 4  ;;  %s42_s30 = int_to_ptr.vmem [resolvable:$true] %s41_s30  ;;  %s3582_s16 = int_to_ptr.vmem [resolvable:$true] %s29_s16 }
   0x4   :  { %s3404_s19 = scalar_lea.hbm %s4093_s2, 6144 }
   0x5   :  { %p3405_p0 = scmp.ne.s32.totalorder %s4093_s2, %s3404_s19  ;;  %p3408_p1 = scmp.lt.u32.totalorder %s3404_s19, %s4093_s2 }
   0x7   :  { %p3410_p2 = pnand %p3408_p1, %p3405_p0 }
   0x9   :  { %3413 = shalt.err (!%p3410_p2)
}
   0xa   :  { %s3414_s24 = scalar_lea.vmem %s42_s30, 6144  ;;  %p3419_p4 = scmp.lt.s32.totalorder %s42_s30, %s42_s30 }
   0xb   :  { %p3415_p3 = scmp.ne.s32.totalorder %s42_s30, %s3414_s24  ;;  %p3420_p5 = scmp.lt.s32.totalorder %s3414_s24, %s3414_s24 }
   0xd   :  { %p3421_p6 = por %p3420_p5, %p3419_p4 }
   0xf   :  { %p3422_p7 = pnand %p3421_p6, %p3415_p3 }
  0x11   :  { %3425 = shalt.err (!%p3422_p7)
}
  0x12   :  { %s3500_s25 = smov 128   ;;  %s3501_s26 = smov 8  }
  0x13   :  { %47 = dma.hbm_to_vmem [thread:$0]  %s4093_s2, 6144, %s42_s30, [#allocation6], %s3500_s25, %s3500_s25, %s3501_s26  }
  0x14   :  { %s3426_s17 = scalar_lea.hbm %s4092_s1, 3072 }
  0x15   :  { %p3427_p8 = scmp.ne.s32.totalorder %s4092_s1, %s3426_s17  ;;  %p3430_p9 = scmp.lt.u32.totalorder %s3426_s17, %s4092_s1 }
  0x17   :  { %p3432_p10 = pnand %p3430_p9, %p3427_p8 }
  0x19   :  { %3435 = shalt.err (!%p3432_p10)
}
  0x1a   :  { %s3436_s22 = scalar_lea.vmem %s3582_s16, 3072  ;;  %p3441_p12 = scmp.lt.s32.totalorder %s3582_s16, %s3582_s16 }
  0x1b   :  { %p3437_p11 = scmp.ne.s32.totalorder %s3582_s16, %s3436_s22  ;;  %p3442_p13 = scmp.lt.s32.totalorder %s3436_s22, %s3436_s22 }
  0x1d   :  { %p3443_p0 = por %p3442_p13, %p3441_p12 }
  0x1f   :  { %p3444_p1 = pnand %p3443_p0, %p3437_p11 }
  0x21   :  { %3447 = shalt.err (!%p3444_p1)
}
  0x22   :  { %35 = dma.hbm_to_vmem [thread:$0]  %s4092_s1, 3072, %s3582_s16, [#allocation3], %s3500_s25, %s3500_s25, %s3501_s26  }
  0x23   :  { %s3502_s23 = smov [#allocation7]   ;;  %s3448_s29 = scalar_lea.hbm %s4096_s5, 512 }
  0x24   :  { %s57_s24 = sshll.u32 %s3502_s23, 4  ;;  %p3449_p2 = scmp.ne.s32.totalorder %s4096_s5, %s3448_s29  ;;  %s58_s24 = int_to_ptr.vmem [resolvable:$true] %s57_s24 }
  0x25   :  { %p3452_p3 = scmp.lt.u32.totalorder %s3448_s29, %s4096_s5 }
  0x27   :  { %p3454_p4 = pnand %p3452_p3, %p3449_p2 }
  0x29   :  { %3457 = shalt.err (!%p3454_p4)
}
  0x2a   :  { %s3458_s20 = scalar_lea.vmem %s58_s24, 512  ;;  %p3463_p6 = scmp.lt.s32.totalorder %s58_s24, %s58_s24 }
  0x2b   :  { %p3459_p5 = scmp.ne.s32.totalorder %s58_s24, %s3458_s20  ;;  %p3464_p7 = scmp.lt.s32.totalorder %s3458_s20, %s3458_s20 }
  0x2d   :  { %p3465_p8 = por %p3464_p7, %p3463_p6 }
  0x2f   :  { %p3466_p9 = pnand %p3465_p8, %p3459_p5 }
  0x31   :  { %3469 = shalt.err (!%p3466_p9)
}
  0x32   :  { %63 = dma.hbm_to_vmem [thread:$0]  %s4096_s5, 512, %s58_s24, [#allocation6], %s3500_s25, %s3500_s25, %s3501_s26  }
  0x33   :  { %3492 = dma.done.wait [#allocation3], 3072  }
  0x34   :  { %3493 = vsyncadd [#allocation3], 4294964224 }
  0x35   :  { %3494 = dma.done.wait [#allocation6], 6656  }
  0x36   :  { %3495 = vsyncadd [#allocation6], 4294960640  ;;  %vm101_vm0 = vcmask 261120   ;;  %v89_v0 = vld [vmem:[%s4091_s0] sm:$0xff]  ;;  %v90_v1 = vld [vmem:[%s4091_s0 + $0x8] sm:$0xff]  ;;  %vm312_vm1 = vcmask 523264  }
  0x37   :  { %v91_v2 = vld [vmem:[%s4091_s0 + $0x10] sm:$0xff]  ;;  %v3033_v3 = vpack.c.bf16 %v90_v1, %v89_v0  ;;  %v3646_v4 = vld [vmem:[%s4091_s0 + $0x18] sm:$0xff]  ;;  %v3651_v5 = vld [vmem:[%s4095_s4] sm:$0xff]  ;;  %v3503_v44 = vmov 0.0|0.0   ;;  %vm3504_vm2 = vmmov 0   ;;  %vm806_vm3 = vcmask 64512  }
  0x38   :  { %v3037_v6 = vpack.c.bf16 %v3646_v4, %v91_v2  ;;  %2543 = vmatprep.mubr.msk.f32.mxu0 %vm101_vm0, %v3651_v5  ;;  %v3656_v7 = vld [vmem:[#allocation7] sm:$0xff]  ;;  %v305_v9 = vld [vmem:[#allocation2 + $0x48] sm:$0xff]  ;;  %v306_v11 = vld [vmem:[#allocation2 + $0x50] sm:$0xff] }
  0x39   :  { %3034 = vmatprep.subr.bf16.mxu0 %v3033_v3  ;;  %3042 = vmatprep.subr.bf16.mxu1 %v3033_v3  ;;  %v304_v8 = vld [vmem:[#allocation2 + $0x40] sm:$0xff]  ;;  %v307_v12 = vld [vmem:[#allocation2 + $0x58] sm:$0xff]  ;;  %v3663_v13 = vld [vmem:[%s4095_s4 + $0x8] sm:$0xff] }
  0x3a   :  { %3036 = vmatpush3.bf16.msra.mxu0 %v3033_v3  ;;  %3044 = vmatpush3.bf16.msra.mxu1 %v3033_v3  ;;  %v3049_v10 = vpack.c.bf16 %v305_v9, %v304_v8  ;;  %v3665_v14 = vld [vmem:[#allocation7 + $0x8] sm:$0xff]  ;;  %v3670_v15 = vld [vmem:[%s4095_s4 + $0x10] sm:$0xff]  ;;  %v3053_v17 = vpack.c.bf16 %v307_v12, %v306_v11  ;;  %v308_v18 = vld [vmem:[#allocation2 + $0x60] sm:$0xff] }
  0x3b   :  { %3038 = vmatprep.subr.bf16.mxu0 %v3037_v6  ;;  %3046 = vmatprep.subr.bf16.mxu1 %v3037_v6  ;;  %v3672_v16 = vld [vmem:[#allocation7 + $0x10] sm:$0xff]  ;;  %v309_v19 = vld [vmem:[#allocation2 + $0x68] sm:$0xff]  ;;  %v3683_v20 = vld [vmem:[%s4095_s4 + $0x18] sm:$0xff] }
  0x3c   :  { %2557 = vmatprep.mubr.msk.f32.mxu1 %vm101_vm0, %v3656_v7  ;;  %v3687_v21 = vld [vmem:[#allocation7 + $0x18] sm:$0xff]  ;;  %v3057_v22 = vpack.c.bf16 %v309_v19, %v308_v18  ;;  %v310_v23 = vld [vmem:[#allocation2 + $0x70] sm:$0xff]  ;;  %v296_v26 = vld [vmem:[#allocation2] sm:$0xff] }
  0x3d   :  { %v311_v24 = vld [vmem:[#allocation2 + $0x78] sm:$0xff]  ;;  %v297_v27 = vld [vmem:[#allocation2 + $0x8] sm:$0xff]  ;;  %v298_v29 = vld [vmem:[#allocation2 + $0x10] sm:$0xff] }
  0x3e   :  { %3040 = vmatpush3.bf16.msra.mxu0 %v3037_v6  ;;  %3048 = vmatpush3.bf16.msra.mxu1 %v3037_v6  ;;  %v3061_v25 = vpack.c.bf16 %v311_v24, %v310_v23  ;;  %v3065_v28 = vpack.c.bf16 %v297_v27, %v296_v26  ;;  %v299_v30 = vld [vmem:[#allocation2 + $0x18] sm:$0xff]  ;;  %v300_v32 = vld [vmem:[#allocation2 + $0x20] sm:$0xff]  ;;  %v301_v33 = vld [vmem:[#allocation2 + $0x28] sm:$0xff]  ;;  %v3505_v27 = vmov 0.0  }
  0x3f   :  { %3050 = vmatprep.subr.bf16.mxu0 %v3049_v10  ;;  %v3069_v31 = vpack.c.bf16 %v299_v30, %v298_v29  ;;  %v3073_v34 = vpack.c.bf16 %v301_v33, %v300_v32  ;;  %v302_v35 = vld [vmem:[#allocation2 + $0x30] sm:$0xff]  ;;  %v303_v36 = vld [vmem:[#allocation2 + $0x38] sm:$0xff]  ;;  %v507_v38 = vld [vmem:[#allocation2 + $0x80] sm:$0xff]  ;;  %3097 = vmatprep.subr.bf16.mxu1 %v3503_v44 }
  0x40   :  { %v3077_v37 = vpack.c.bf16 %v303_v36, %v302_v35  ;;  %v508_v39 = vld [vmem:[#allocation2 + $0x88] sm:$0xff]  ;;  %v625_v41 = vld [vmem:[%s4103_s12] sm:$0xff]  ;;  %v627_v43 = vld [vmem:[%s4103_s12 + $0x10] sm:$0xff] }
  0x41   :  { %2544 = vmatmul.mubr.msk.f32.vlgmr.msra.gmra.mrb[0].mxu0 %vm101_vm0, %v3663_v13  ;;  %2558 = vmatmul.mubr.msk.f32.vlgmr.msra.gmra.mrb[0].mxu1 %vm101_vm0, %v3665_v14  ;;  %v3081_v40 = vpack.c.bf16 %v508_v39, %v507_v38  ;;  %v626_v42 = vld [vmem:[%s4103_s12 + $0x8] sm:$0xff]  ;;  %v628_v46 = vld [vmem:[%s4103_s12 + $0x18] sm:$0xff]  ;;  %v629_v48 = vld [vmem:[%s4103_s12 + $0x20] sm:$0xff] }
  0x42   :  { %2546 = vmatprep.mubr.msk.f32.mxu0 %vm101_vm0, %v3670_v15  ;;  %2560 = vmatprep.mubr.msk.f32.mxu1 %vm101_vm0, %v3672_v16  ;;  %v3708_v45 = vpack.c.bf16 %v626_v42, %v625_v41  ;;  %v3714_v47 = vpack.c.bf16 %v628_v46, %v627_v43  ;;  %v630_v49 = vld [vmem:[%s4103_s12 + $0x28] sm:$0xff]  ;;  %v509_v51 = vld [vmem:[#allocation2 + $0x90] sm:$0xff]  ;;  %v510_v52 = vld [vmem:[#allocation2 + $0x98] sm:$0xff] }
  0x43   :  { %3052 = vmatpush3.bf16.msra.mxu0 %v3049_v10  ;;  %v3724_v50 = vpack.c.bf16 %v630_v49, %v629_v48  ;;  %v3085_v56 = vpack.c.bf16 %v510_v52, %v509_v51  ;;  %v511_v58 = vld [vmem:[#allocation2 + $0xa0] sm:$0xff]  ;;  %v512_v59 = vld [vmem:[#allocation2 + $0xa8] sm:$0xff]  ;;  %v632_v6 = vld [vmem:[%s4103_s12 + $0x38] sm:$0xff] }
  0x44   :  { %3054 = vmatprep.subr.bf16.mxu0 %v3053_v17  ;;  %3099 = vmatpush3.bf16.msra.mxu1 %v3708_v45  ;;  %v3089_v63 = vpack.c.bf16 %v512_v59, %v511_v58  ;;  %v633_v9 = vld [vmem:[%s4103_s12 + $0x40] sm:$0xff]  ;;  %v634_v10 = vld [vmem:[%s4103_s12 + $0x48] sm:$0xff]  ;;  %v635_v12 = vld [vmem:[%s4103_s12 + $0x50] sm:$0xff] }
  0x45   :  { %2547 = vmatmul.mubr.msk.f32.gmra.mrb[2].mxu0 %vm101_vm0, %v3683_v20  ;;  %2561 = vmatmul.mubr.msk.f32.gmra.mrb[2].mxu1 %vm101_vm0, %v3687_v21  ;;  %v3753_v11 = vpack.c.bf16 %v634_v10, %v633_v9  ;;  %v637_v19 = vld [vmem:[%s4103_s12 + $0x60] sm:$0xff]  ;;  %v639_v24 = vld [vmem:[%s4103_s12 + $0x70] sm:$0xff] }
  0x46   :  { %2579 = vmatprep.mubr.msk.f32.mxu0 %vm312_vm1, %v89_v0  ;;  %3100 = vmatprep.subr.bf16.mxu1 %v3503_v44  ;;  %v3834_v58 = vld [vmem:[%s4104_s13] sm:$0xff] }
  0x47   :  { %3056 = vmatpush3.bf16.msra.mxu0 %v3053_v17  ;;  %v636_v17 = vld [vmem:[%s4103_s12 + $0x58] sm:$0xff]  ;;  %2661 = vmatprep.mubr.msk.f32.mxu1 %vm3504_vm2, %v3505_v27  ;;  %v802_v9 = vld [vmem:[%s4098_s7] sm:$0x1] }
  0x48   :  { %3058 = vmatprep.subr.bf16.mxu0 %v3057_v22  ;;  %3102 = vmatpush3.bf16.msra.mxu1 %v3714_v47  ;;  %v3763_v18 = vpack.c.bf16 %v636_v17, %v635_v12  ;;  %v953_v17 = vlaneseq }
  0x49   :  { %3103 = vmatprep.subr.bf16.mxu1 %v3503_v44 }
  0x4b   :  { %3060 = vmatpush3.bf16.msra.mxu0 %v3057_v22  ;;  %v638_v22 = vld [vmem:[%s4103_s12 + $0x68] sm:$0xff] }
  0x4c   :  { %3062 = vmatprep.subr.bf16.mxu0 %v3061_v25  ;;  %3105 = vmatpush3.bf16.msra.mxu1 %v3724_v50  ;;  %v3773_v23 = vpack.c.bf16 %v638_v22, %v637_v19  ;;  %v954_v19 = vshrl.u32 %v953_v17, 7  ;;  %v1147_v17 = vld [vmem:[#allocation5 + $0x20] sm:$0xff] }
  0x4d   :  { %3106 = vmatprep.subr.bf16.mxu1 %v3503_v44 }
  0x4e   :  { %v3851_v22 = vsub.s32 0, %v954_v19  ;;  %v1148_v19 = vld [vmem:[#allocation5 + $0x28] sm:$0xff] }
  0x4f   :  { %3064 = vmatpush3.bf16.msra.mxu0 %v3061_v25  ;;  %v640_v25 = vld [vmem:[%s4103_s12 + $0x78] sm:$0xff] }
  0x50   :  { %3066 = vmatprep.subr.bf16.mxu0 %v3065_v28  ;;  %v3783_v26 = vpack.c.bf16 %v640_v25, %v639_v24 }
  0x52   :  { %2580 = vmatmul.mubr.msk.f32.vlgmr.msra.gmra.mrb[4].mxu0 %vm312_vm1, %v90_v1  ;;  %v513_v1 = vld [vmem:[#allocation2 + $0xb0] sm:$0xff] }
  0x53   :  { %3068 = vmatpush3.bf16.msra.mxu0 %v3065_v28  ;;  %2582 = vmatprep.mubr.msk.f32.mxu0 %vm312_vm1, %v91_v2  ;;  %v514_v2 = vld [vmem:[#allocation2 + $0xb8] sm:$0xff] }
  0x54   :  { %3070 = vmatprep.subr.bf16.mxu0 %v3069_v31  ;;  %v3093_v3 = vpack.c.bf16 %v514_v2, %v513_v1 }
  0x56   :  { %2583 = vmatmul.mubr.msk.f32.gmra.mrb[6].mxu0 %vm312_vm1, %v3646_v4  ;;  %v631_v4 = vld [vmem:[%s4103_s12 + $0x30] sm:$0xff] }
  0x57   :  { %3072 = vmatpush3.bf16.msra.mxu0 %v3069_v31  ;;  %v3743_v8 = vpack.c.bf16 %v632_v6, %v631_v4 }
  0x58   :  { %3074 = vmatprep.subr.bf16.mxu0 %v3073_v34 }
  0x59   :  { %3108 = vmatpush3.bf16.msra.mxu1 %v3743_v8 }
  0x5a   :  { %3109 = vmatprep.subr.bf16.mxu1 %v3503_v44 }
  0x5b   :  { %3076 = vmatpush3.bf16.msra.mxu0 %v3073_v34 }
  0x5c   :  { %3078 = vmatprep.subr.bf16.mxu0 %v3077_v37 }
  0x5d   :  { %3111 = vmatpush3.bf16.msra.mxu1 %v3753_v11 }
  0x5e   :  { %3112 = vmatprep.subr.bf16.mxu1 %v3503_v44 }
  0x5f   :  { %3080 = vmatpush3.bf16.msra.mxu0 %v3077_v37 }
  0x60   :  { %3082 = vmatprep.subr.bf16.mxu0 %v3081_v40 }
  0x61   :  { %3114 = vmatpush3.bf16.msra.mxu1 %v3763_v18 }
  0x62   :  { %3115 = vmatprep.subr.bf16.mxu1 %v3503_v44 }
  0x65   :  { %3117 = vmatpush3.bf16.msra.mxu1 %v3773_v23 }
  0x66   :  { %3118 = vmatprep.subr.bf16.mxu1 %v3503_v44 }
  0x69   :  { %3120 = vmatpush3.bf16.msra.mxu1 %v3783_v26 }
  0x6a   :  { %3121 = vmatprep.subr.bf16.mxu1 %v3503_v44 }
 0x114   :  { %v2545_v53 = vpop.f32.mrb[0].mxu0  ;;  %v2559_v54 = vpop.f32.mrb[0].mxu1 }
 0x115   :  { %v180_v55 = vpop.f32.mrb[1].mxu0  ;;  %v277_v57 = vpop.f32.mrb[1].mxu1 }
 0x116   :  { %2601 = vmatprep.mubr.msk.f32.mxu0 %vm312_vm1, %v180_v55 }
 0x117   :  { %2602 = vmatmul.mubr.msk.f32.vlgmr.msra.gmra.mrb[4].mxu0 %vm312_vm1, %v2545_v53 }
 0x118   :  { %3084 = vmatpush3.bf16.msra.mxu0 %v3081_v40  ;;  %v2548_v60 = vpop.f32.mrb[2].mxu0  ;;  %v2562_v61 = vpop.f32.mrb[2].mxu1 }
 0x119   :  { %3086 = vmatprep.subr.bf16.mxu0 %v3085_v56  ;;  %v190_v62 = vpop.f32.mrb[3].mxu0  ;;  %v287_v0 = vpop.f32.mrb[3].mxu1 }
 0x11a   :  { %2604 = vmatprep.mubr.msk.f32.mxu0 %vm312_vm1, %v190_v62 }
 0x11b   :  { %2605 = vmatmul.mubr.msk.f32.gmra.mrb[6].mxu0 %vm312_vm1, %v2548_v60 }
 0x11c   :  { %3088 = vmatpush3.bf16.msra.mxu0 %v3085_v56  ;;  %2623 = vmatprep.mubr.msk.f32.mxu0 %vm312_vm1, %v277_v57 }
 0x11d   :  { %3090 = vmatprep.subr.bf16.mxu0 %v3089_v63 }
 0x120   :  { %3092 = vmatpush3.bf16.msra.mxu0 %v3089_v63 }
 0x121   :  { %3094 = vmatprep.subr.bf16.mxu0 %v3093_v3 }
 0x124   :  { %3096 = vmatpush3.bf16.msra.mxu0 %v3093_v3 }
 0x125   :  { %2699 = vmatprep.subr.mxu0 %v3505_v27 }
 0x127   :  { %2624 = vmatmul.mubr.msk.f32.vlgmr.msra.gmra.mrb[4].mxu0 %vm312_vm1, %v2559_v54 }
 0x128   :  { %2626 = vmatprep.mubr.msk.f32.mxu0 %vm312_vm1, %v287_v0  ;;  %2700 = vmatpush3.msra.mxu0 %v3834_v58 }
 0x129   :  { %2704 = vmatprep.subr.mxu0 %v3505_v27 }
 0x12b   :  { %2627 = vmatmul.mubr.msk.f32.gmra.mrb[6].mxu0 %vm312_vm1, %v2562_v61 }
 0x12c   :  { %2701 = vmatprep.mubr.msk.f32.mxu0 %vm3504_vm2, %v3505_v27 }
 0x1fa   :  { %v3792_v28 = vpop.f32.mrb[4].mxu0 }
 0x1fb   :  { %v712_v29 = vmul.f32 %v3792_v28, %v3792_v28  ;;  %v3796_v30 = vpop.f32.mrb[5].mxu0 }
 0x1fc   :  { %v616_v31 = vadd.f32 %v3792_v28, %v3796_v30  ;;  %v711_v32 = vmul.f32 %v3796_v30, %v3796_v30 }
 0x1fe   :  { %v715_v33 = vadd.f32 %v712_v29, %v711_v32  ;;  %v3802_v34 = vpop.f32.mrb[6].mxu0 }
 0x1ff   :  { %v3804_v35 = vpop.f32.mrb[7].mxu0  ;;  %v714_v38 = vmul.f32 %v3802_v34, %v3802_v34 }
 0x200   :  { %v617_v36 = vadd.f32 %v616_v31, %v3804_v35  ;;  %v713_v37 = vmul.f32 %v3804_v35, %v3804_v35 }
 0x202   :  { %v618_v39 = vadd.f32 %v3802_v34, %v617_v36  ;;  %v716_v40 = vadd.f32 %v715_v33, %v713_v37 }
 0x204   :  { %v619_v41 = vrot.slane %v618_v39, 4  ;;  %v717_v42 = vadd.f32 %v716_v40, %v714_v38 }
 0x206   :  { %v620_v43 = vadd.f32 %v619_v41, %v618_v39  ;;  %v718_v52 = vrot.slane %v717_v42, 4 }
 0x208   :  { %v621_v46 = vrot.slane %v620_v43, 2  ;;  %v719_v53 = vadd.f32 %v718_v52, %v717_v42  ;;  %v1161_v52 = vld [vmem:[#allocation5 + $0x90] sm:$0xff] }
 0x20a   :  { %v622_v48 = vadd.f32 %v621_v46, %v620_v43  ;;  %v720_v54 = vrot.slane %v719_v53, 2 }
 0x20c   :  { %v623_v49 = vrot.slane %v622_v48, 1  ;;  %v721_v55 = vadd.f32 %v720_v54, %v719_v53  ;;  %v1162_v53 = vld [vmem:[#allocation5 + $0x98] sm:$0xff] }
 0x20d   :  { %v3165_v54 = vpack.c.bf16 %v1162_v53, %v1161_v52 }
 0x20e   :  { %v624_v51 = vadd.f32 %v623_v49, %v622_v48  ;;  %v722_v56 = vrot.slane %v721_v55, 1  ;;  %v1159_v48 = vld [vmem:[#allocation5 + $0x80] sm:$0xff]  ;;  %v1160_v49 = vld [vmem:[#allocation5 + $0x88] sm:$0xff] }
 0x210   :  { %2662 = vmatmul.mubr.f32.vlgmr.msra.gmra.mrb[4].mxu1 %v624_v51  ;;  %v723_v57 = vadd.f32 %v722_v56, %v721_v55  ;;  %v3161_v51 = vpack.c.bf16 %v1160_v49, %v1159_v48  ;;  %v1163_v55 = vld [vmem:[#allocation5 + $0xa0] sm:$0xff]  ;;  %v1164_v56 = vld [vmem:[#allocation5 + $0xa8] sm:$0xff]  ;;  %v1348_v48 = vld [vmem:[#allocation5 + $0x118] sm:$0xff] }
 0x211   :  { %3123 = vmatpush3.bf16.msra.mxu1 %v3708_v45  ;;  %2696 = vmatprep.mubr.msk.f32.mxu1 %vm3504_vm2, %v3505_v27 }
 0x212   :  { %3124 = vmatprep.subr.bf16.mxu1 %v3503_v44 }
 0x215   :  { %3126 = vmatpush3.bf16.msra.mxu1 %v3714_v47 }
 0x216   :  { %3127 = vmatprep.subr.bf16.mxu1 %v3503_v44 }
 0x219   :  { %3129 = vmatpush3.bf16.msra.mxu1 %v3724_v50 }
 0x21a   :  { %3130 = vmatprep.subr.bf16.mxu1 %v3503_v44 }
 0x21d   :  { %3132 = vmatpush3.bf16.msra.mxu1 %v3743_v8 }
 0x21e   :  { %3133 = vmatprep.subr.bf16.mxu1 %v3503_v44 }
 0x221   :  { %3135 = vmatpush3.bf16.msra.mxu1 %v3753_v11 }
 0x222   :  { %3136 = vmatprep.subr.bf16.mxu1 %v3503_v44 }
 0x225   :  { %3138 = vmatpush3.bf16.msra.mxu1 %v3763_v18 }
 0x226   :  { %3139 = vmatprep.subr.bf16.mxu1 %v3503_v44 }
 0x229   :  { %3141 = vmatpush3.bf16.msra.mxu1 %v3773_v23 }
 0x22a   :  { %3142 = vmatprep.subr.bf16.mxu1 %v3503_v44 }
 0x22d   :  { %3144 = vmatpush3.bf16.msra.mxu1 %v3783_v26 }
 0x230   :  { %2697 = vmatmul.mubr.f32.vlgmr.msra.gmra.mrb[6].mxu1 %v723_v57  ;;  %v3169_v57 = vpack.c.bf16 %v1164_v56, %v1163_v55  ;;  %v1349_v55 = vld [vmem:[#allocation5 + $0x120] sm:$0xff]  ;;  %v1350_v56 = vld [vmem:[#allocation5 + $0x128] sm:$0xff] }
 0x231   :  { %2731 = vmatprep.mubr.msk.f32.mxu1 %vm101_vm0, %v3656_v7  ;;  %v798_v7 = vld [vmem:[%s4097_s6] sm:$0x1] }
 0x2e3   :  { %v707_v59 = vpop.f32.mrb[4].mxu1 }
 0x2e4   :  { %v2663_v60 = vpop.f32.mrb[5].mxu1  ;;  %v794_v61 = vmul.f32 0.001953125, %v707_v59  ;;  %v1165_v59 = vld [vmem:[#allocation5 + $0xb0] sm:$0xff] }
 0x2e5   :  { %v1166_v60 = vld [vmem:[#allocation5 + $0xb8] sm:$0xff] }
 0x2e6   :  { %v796_v63 = vmul.f32 %v794_v61, %v794_v61 }
 0x303   :  { %v790_v62 = vpop.f32.mrb[6].mxu1 }
 0x304   :  { %v795_v0 = vmul.f32 0.001953125, %v790_v62  ;;  %v2698_v1 = vpop.f32.mrb[7].mxu1  ;;  %v1171_v62 = vld [vmem:[#allocation5 + $0xe0] sm:$0xff] }
 0x305   :  { %v1173_v1 = vld [vmem:[#allocation5 + $0xf0] sm:$0xff] }
 0x306   :  { %v797_v2 = vsub.f32 %v795_v0, %v796_v63  ;;  %v1172_v63 = vld [vmem:[#allocation5 + $0xe8] sm:$0xff] }
 0x307   :  { %v3185_v0 = vpack.c.bf16 %v1172_v63, %v1171_v62  ;;  %v1355_v63 = vld [vmem:[#allocation5 + $0x150] sm:$0xff] }
 0x308   :  { %v799_v3 = vadd.f32 1e-05, %v797_v2  ;;  %v1174_v2 = vld [vmem:[#allocation5 + $0xf8] sm:$0xff] }
 0x30a   :  { %3394 = vrsqrt.f32 %v799_v3  ;;  %v3189_v3 = vpack.c.bf16 %v1174_v2, %v1173_v1  ;;  %v1357_v2 = vld [vmem:[#allocation5 + $0x160] sm:$0xff] }
 0x314   :  { %v3395_v4 = vpop.eup %3394 }
 0x315   :  { %v801_v6 = vmul.f32 %v3395_v4, %v798_v7  ;;  %v1143_v7 = vld [vmem:[#allocation5] sm:$0xff]  ;;  %v1144_v4 = vld [vmem:[#allocation5 + $0x8] sm:$0xff] }
 0x317   :  { %2702 = vmatmul.mubr.msk.f32.vlgmr.msra.gmra.mrb[8].mxu0 %vm806_vm3, %v801_v6  ;;  %v803_v10 = vmul.f32 %v801_v6, %v794_v61  ;;  %v3193_v6 = vpack.c.bf16 %v1144_v4, %v1143_v7  ;;  %v1359_v4 = vld [vmem:[#allocation5 + $0x170] sm:$0xff] }
 0x318   :  { %2705 = vmatpush3.msra.mxu0 %v3834_v58  ;;  %2706 = vmatprep.mubr.msk.f32.mxu0 %vm3504_vm2, %v3505_v27 }
 0x319   :  { %v804_v12 = vsub.f32 %v802_v9, %v803_v10  ;;  %v1145_v9 = vld [vmem:[#allocation5 + $0x10] sm:$0xff]  ;;  %v1146_v10 = vld [vmem:[#allocation5 + $0x18] sm:$0xff] }
 0x31b   :  { %2707 = vmatmul.mubr.msk.f32.vlgmr.msra.gmra.mrb[10].mxu0 %vm806_vm3, %v804_v12  ;;  %v3197_v12 = vpack.c.bf16 %v1146_v10, %v1145_v9 }
 0x31c   :  { %2717 = vmatprep.mubr.msk.f32.mxu0 %vm101_vm0, %v3651_v5 }
 0x3ea   :  { %v876_v24 = vpop.f32.mrb[8].mxu0 }
 0x3eb   :  { %v956_v25 = vrot.slane %v876_v24, %v3851_v22  ;;  %v2703_v29 = vpop.f32.mrb[9].mxu0  ;;  %v3201_v24 = vpack.c.bf16 %v1148_v19, %v1147_v17 }
 0x3ec   :  { %v1150_v29 = vld [vmem:[#allocation5 + $0x38] sm:$0xff] }
 0x3ed   :  { %v957_v31 = vmul.f32 %v956_v25, %v3796_v30  ;;  %v958_v32 = vmul.f32 %v3792_v28, %v956_v25  ;;  %v959_v33 = vmul.f32 %v956_v25, %v3804_v35  ;;  %v960_v36 = vmul.f32 %v3802_v34, %v956_v25  ;;  %v1149_v25 = vld [vmem:[#allocation5 + $0x30] sm:$0xff] }
 0x3ee   :  { %v949_v37 = vpop.f32.mrb[10].mxu0 }
 0x3ef   :  { %v964_v38 = vrot.slane %v949_v37, %v3851_v22  ;;  %v2708_v5 = vpop.f32.mrb[11].mxu0  ;;  %v1153_v37 = vld [vmem:[#allocation5 + $0x50] sm:$0xff] }
 0x3f1   :  { %v965_v39 = vadd.f32 %v964_v38, %v957_v31  ;;  %v3859_v40 = vadd.f32 %v964_v38, %v958_v32  ;;  %v3861_v41 = vadd.f32 %v964_v38, %v959_v33  ;;  %v3863_v42 = vadd.f32 %v964_v38, %v960_v36  ;;  %v1151_v32 = vld [vmem:[#allocation5 + $0x40] sm:$0xff]  ;;  %v1152_v33 = vld [vmem:[#allocation5 + $0x48] sm:$0xff]  ;;  %v1154_v38 = vld [vmem:[#allocation5 + $0x58] sm:$0xff] }
 0x3f2   :  { %v3205_v31 = vpack.c.bf16 %v1150_v29, %v1149_v25  ;;  %v3209_v36 = vpack.c.bf16 %v1152_v33, %v1151_v32  ;;  %v3213_v5 = vpack.c.bf16 %v1154_v38, %v1153_v37 }
 0x3f3   :  { %v969_v43 = vmax.f32 %v965_v39, 0.0  ;;  %v970_v30 = vmax.f32 %v3859_v40, 0.0  ;;  %v971_v28 = vmax.f32 %v3861_v41, 0.0  ;;  %v972_v35 = vmax.f32 %v3863_v42, 0.0  ;;  %v1155_v39 = vld [vmem:[#allocation5 + $0x60] sm:$0xff]  ;;  %v1156_v40 = vld [vmem:[#allocation5 + $0x68] sm:$0xff] }
 0x3f4   :  { %v3217_v41 = vpack.c.bf16 %v1156_v40, %v1155_v39  ;;  %v1157_v42 = vld [vmem:[#allocation5 + $0x70] sm:$0xff] }
 0x3f5   :  { %v3145_v34 = vpack.c.bf16 %v970_v30, %v969_v43  ;;  %v3149_v46 = vpack.c.bf16 %v972_v35, %v971_v28 }
 0x3f7   :  { %3146 = vmatprep.subr.bf16.mxu0 %v3145_v34  ;;  %3154 = vmatprep.subr.bf16.mxu1 %v3145_v34 }
 0x3f8   :  { %3148 = vmatpush3.bf16.msra.mxu0 %v3145_v34  ;;  %3156 = vmatpush3.bf16.msra.mxu1 %v3145_v34 }
 0x3f9   :  { %3150 = vmatprep.subr.bf16.mxu0 %v3149_v46  ;;  %3158 = vmatprep.subr.bf16.mxu1 %v3149_v46 }
 0x3fc   :  { %3152 = vmatpush3.bf16.msra.mxu0 %v3149_v46  ;;  %3160 = vmatpush3.bf16.msra.mxu1 %v3149_v46  ;;  %v1347_v46 = vld [vmem:[#allocation5 + $0x110] sm:$0xff] }
 0x3fd   :  { %3162 = vmatprep.subr.bf16.mxu0 %v3161_v51  ;;  %3257 = vmatprep.subr.bf16.mxu1 %v3503_v44  ;;  %v3229_v53 = vpack.c.bf16 %v1348_v48, %v1347_v46 }
 0x3ff   :  { %2718 = vmatmul.mubr.msk.f32.vlgmr.msra.gmra.mrb[12].mxu0 %vm101_vm0, %v3663_v13  ;;  %2732 = vmatmul.mubr.msk.f32.vlgmr.msra.gmra.mrb[8].mxu1 %vm101_vm0, %v3665_v14  ;;  %v3173_v13 = vpack.c.bf16 %v1166_v60, %v1165_v59  ;;  %v1167_v14 = vld [vmem:[#allocation5 + $0xc0] sm:$0xff]  ;;  %v3233_v60 = vpack.c.bf16 %v1350_v56, %v1349_v55 }
 0x400   :  { %3164 = vmatpush3.bf16.msra.mxu0 %v3161_v51  ;;  %2720 = vmatprep.mubr.msk.f32.mxu0 %vm101_vm0, %v3670_v15  ;;  %v1168_v15 = vld [vmem:[#allocation5 + $0xc8] sm:$0xff] }
 0x401   :  { %3166 = vmatprep.subr.bf16.mxu0 %v3165_v54  ;;  %2734 = vmatprep.mubr.msk.f32.mxu1 %vm101_vm0, %v3672_v16  ;;  %v3177_v16 = vpack.c.bf16 %v1168_v15, %v1167_v14  ;;  %v1351_v15 = vld [vmem:[#allocation5 + $0x130] sm:$0xff] }
 0x402   :  { %3259 = vmatpush3.bf16.msra.mxu1 %v3708_v45 }
 0x403   :  { %2721 = vmatmul.mubr.msk.f32.gmra.mrb[14].mxu0 %vm101_vm0, %v3683_v20  ;;  %2735 = vmatmul.mubr.msk.f32.gmra.mrb[10].mxu1 %vm101_vm0, %v3687_v21  ;;  %v1169_v20 = vld [vmem:[#allocation5 + $0xd0] sm:$0xff]  ;;  %v1170_v21 = vld [vmem:[#allocation5 + $0xd8] sm:$0xff] }
 0x404   :  { %3168 = vmatpush3.bf16.msra.mxu0 %v3165_v54  ;;  %2769 = vmatprep.mubr.f32.mxu0 %v969_v43  ;;  %v3181_v61 = vpack.c.bf16 %v1170_v21, %v1169_v20  ;;  %v1158_v43 = vld [vmem:[#allocation5 + $0x78] sm:$0xff]  ;;  %v1353_v21 = vld [vmem:[#allocation5 + $0x140] sm:$0xff] }
 0x405   :  { %3170 = vmatprep.subr.bf16.mxu0 %v3169_v57  ;;  %3260 = vmatprep.subr.bf16.mxu1 %v3503_v44 }
 0x406   :  { %3262 = vmatpush3.bf16.msra.mxu1 %v3714_v47  ;;  %2883 = vmatprep.mubr.msk.f32.mxu1 %vm3504_vm2, %v3505_v27 }
 0x407   :  { %3263 = vmatprep.subr.bf16.mxu1 %v3503_v44 }
 0x408   :  { %3172 = vmatpush3.bf16.msra.mxu0 %v3169_v57 }
 0x409   :  { %3174 = vmatprep.subr.bf16.mxu0 %v3173_v13 }
 0x40a   :  { %3265 = vmatpush3.bf16.msra.mxu1 %v3724_v50 }
 0x40b   :  { %3266 = vmatprep.subr.bf16.mxu1 %v3503_v44 }
 0x40c   :  { %3176 = vmatpush3.bf16.msra.mxu0 %v3173_v13 }
 0x40d   :  { %3178 = vmatprep.subr.bf16.mxu0 %v3177_v16 }
 0x40e   :  { %3268 = vmatpush3.bf16.msra.mxu1 %v3743_v8 }
 0x40f   :  { %3269 = vmatprep.subr.bf16.mxu1 %v3503_v44 }
 0x410   :  { %3180 = vmatpush3.bf16.msra.mxu0 %v3177_v16  ;;  %v1352_v16 = vld [vmem:[#allocation5 + $0x138] sm:$0xff] }
 0x411   :  { %3182 = vmatprep.subr.bf16.mxu0 %v3181_v61  ;;  %v3237_v20 = vpack.c.bf16 %v1352_v16, %v1351_v15  ;;  %v1770_v15 = vld [vmem:[%s4094_s3 + $0x8] sm:$0xff] }
 0x412   :  { %3271 = vmatpush3.bf16.msra.mxu1 %v3753_v11 }
 0x413   :  { %3272 = vmatprep.subr.bf16.mxu1 %v3503_v44 }
 0x414   :  { %3184 = vmatpush3.bf16.msra.mxu0 %v3181_v61  ;;  %v1354_v61 = vld [vmem:[#allocation5 + $0x148] sm:$0xff] }
 0x415   :  { %3186 = vmatprep.subr.bf16.mxu0 %v3185_v0  ;;  %v3241_v62 = vpack.c.bf16 %v1354_v61, %v1353_v21  ;;  %v1620_v61 = vld [vmem:[%s4100_s9] sm:$0x1] }
 0x416   :  { %3274 = vmatpush3.bf16.msra.mxu1 %v3763_v18 }
 0x417   :  { %3275 = vmatprep.subr.bf16.mxu1 %v3503_v44 }
 0x418   :  { %3188 = vmatpush3.bf16.msra.mxu0 %v3185_v0  ;;  %v1356_v0 = vld [vmem:[#allocation5 + $0x158] sm:$0xff] }
 0x419   :  { %3190 = vmatprep.subr.bf16.mxu0 %v3189_v3  ;;  %v3245_v1 = vpack.c.bf16 %v1356_v0, %v1355_v63  ;;  %v1772_v63 = vld [vmem:[%s4094_s3 + $0x18] sm:$0xff] }
 0x41a   :  { %3277 = vmatpush3.bf16.msra.mxu1 %v3773_v23 }
 0x41b   :  { %3278 = vmatprep.subr.bf16.mxu1 %v3503_v44 }
 0x41c   :  { %3192 = vmatpush3.bf16.msra.mxu0 %v3189_v3  ;;  %v1358_v3 = vld [vmem:[#allocation5 + $0x168] sm:$0xff] }
 0x41d   :  { %3194 = vmatprep.subr.bf16.mxu0 %v3193_v6  ;;  %v3249_v7 = vpack.c.bf16 %v1358_v3, %v1357_v2  ;;  %v1773_v3 = vld [vmem:[%s4094_s3 + $0x20] sm:$0xff] }
 0x41e   :  { %3280 = vmatpush3.bf16.msra.mxu1 %v3783_v26 }
 0x41f   :  { %2770 = vmatmul.mubr.f32.vlgmr.msra.gmra.mrb[16].mxu0 %v970_v30  ;;  %3281 = vmatprep.subr.bf16.mxu1 %v3503_v44  ;;  %v3221_v30 = vpack.c.bf16 %v1158_v43, %v1157_v42 }
 0x420   :  { %2772 = vmatprep.mubr.f32.mxu0 %v971_v28  ;;  %3196 = vmatpush3.bf16.msra.mxu0 %v3193_v6  ;;  %v1345_v28 = vld [vmem:[#allocation5 + $0x100] sm:$0xff]  ;;  %v1360_v6 = vld [vmem:[#allocation5 + $0x178] sm:$0xff] }
 0x421   :  { %3198 = vmatprep.subr.bf16.mxu0 %v3197_v12  ;;  %v3253_v9 = vpack.c.bf16 %v1360_v6, %v1359_v4  ;;  %v3400_v4 = vld [vmem:[%s4091_s0] sm:$0xff] }
 0x423   :  { %2773 = vmatmul.mubr.f32.gmra.mrb[18].mxu0 %v972_v35  ;;  %v1346_v35 = vld [vmem:[#allocation5 + $0x108] sm:$0xff] }
 0x424   :  { %3200 = vmatpush3.bf16.msra.mxu0 %v3197_v12  ;;  %v3225_v34 = vpack.c.bf16 %v1346_v35, %v1345_v28 }
 0x425   :  { %3202 = vmatprep.subr.bf16.mxu0 %v3201_v24 }
 0x428   :  { %3204 = vmatpush3.bf16.msra.mxu0 %v3201_v24 }
 0x429   :  { %3206 = vmatprep.subr.bf16.mxu0 %v3205_v31 }
 0x42c   :  { %3208 = vmatpush3.bf16.msra.mxu0 %v3205_v31 }
 0x42d   :  { %3210 = vmatprep.subr.bf16.mxu0 %v3209_v36 }
 0x430   :  { %3212 = vmatpush3.bf16.msra.mxu0 %v3209_v36 }
 0x431   :  { %3214 = vmatprep.subr.bf16.mxu0 %v3213_v5 }
 0x434   :  { %3216 = vmatpush3.bf16.msra.mxu0 %v3213_v5 }
 0x435   :  { %3218 = vmatprep.subr.bf16.mxu0 %v3217_v41 }
 0x438   :  { %3220 = vmatpush3.bf16.msra.mxu0 %v3217_v41 }
 0x439   :  { %3222 = vmatprep.subr.bf16.mxu0 %v3221_v30 }
 0x43c   :  { %3224 = vmatpush3.bf16.msra.mxu0 %v3221_v30 }
 0x43d   :  { %3226 = vmatprep.subr.bf16.mxu0 %v3225_v34 }
 0x4d2   :  { %v2719_v49 = vpop.f32.mrb[12].mxu0  ;;  %v2733_v51 = vpop.f32.mrb[8].mxu1 }
 0x4d3   :  { %v1039_v52 = vpop.f32.mrb[13].mxu0  ;;  %v1124_v54 = vpop.f32.mrb[9].mxu1 }
 0x4d4   :  { %2807 = vmatprep.mubr.f32.mxu0 %v1039_v52 }
 0x4d5   :  { %2808 = vmatmul.mubr.f32.vlgmr.msra.gmra.mrb[16].mxu0 %v2719_v49 }
 0x4d6   :  { %3228 = vmatpush3.bf16.msra.mxu0 %v3225_v34  ;;  %v2722_v57 = vpop.f32.mrb[14].mxu0  ;;  %v2736_v59 = vpop.f32.mrb[10].mxu1 }
 0x4d7   :  { %3230 = vmatprep.subr.bf16.mxu0 %v3229_v53  ;;  %v1049_v13 = vpop.f32.mrb[15].mxu0  ;;  %v1134_v14 = vpop.f32.mrb[11].mxu1 }
 0x4d8   :  { %2810 = vmatprep.mubr.f32.mxu0 %v1049_v13  ;;  %v1616_v13 = vld [vmem:[%s4099_s8] sm:$0x1] }
 0x4d9   :  { %2811 = vmatmul.mubr.f32.gmra.mrb[18].mxu0 %v2722_v57 }
 0x4da   :  { %3232 = vmatpush3.bf16.msra.mxu0 %v3229_v53  ;;  %2845 = vmatprep.mubr.f32.mxu0 %v1124_v54 }
 0x4db   :  { %3234 = vmatprep.subr.bf16.mxu0 %v3233_v60 }
 0x4de   :  { %3236 = vmatpush3.bf16.msra.mxu0 %v3233_v60 }
 0x4df   :  { %3238 = vmatprep.subr.bf16.mxu0 %v3237_v20 }
 0x4e2   :  { %3240 = vmatpush3.bf16.msra.mxu0 %v3237_v20 }
 0x4e3   :  { %3242 = vmatprep.subr.bf16.mxu0 %v3241_v62 }
 0x4e6   :  { %3244 = vmatpush3.bf16.msra.mxu0 %v3241_v62  ;;  %v1771_v62 = vld [vmem:[%s4094_s3 + $0x10] sm:$0xff] }
 0x4e7   :  { %3246 = vmatprep.subr.bf16.mxu0 %v3245_v1  ;;  %v3309_v2 = vpack.c.bf16 %v1772_v63, %v1771_v62 }
 0x4ea   :  { %3248 = vmatpush3.bf16.msra.mxu0 %v3245_v1 }
 0x4eb   :  { %3250 = vmatprep.subr.bf16.mxu0 %v3249_v7 }
 0x4ee   :  { %3252 = vmatpush3.bf16.msra.mxu0 %v3249_v7  ;;  %v1774_v7 = vld [vmem:[%s4094_s3 + $0x28] sm:$0xff] }
 0x4ef   :  { %3254 = vmatprep.subr.bf16.mxu0 %v3253_v9  ;;  %v3313_v6 = vpack.c.bf16 %v1774_v7, %v1773_v3 }
 0x4f2   :  { %3256 = vmatpush3.bf16.msra.mxu0 %v3253_v9  ;;  %v1775_v9 = vld [vmem:[%s4094_s3 + $0x30] sm:$0xff] }
 0x4f3   :  { %3345 = vmatprep.subr.bf16.mxu0 %v3503_v44 }
 0x4f5   :  { %2846 = vmatmul.mubr.f32.vlgmr.msra.gmra.mrb[16].mxu0 %v2733_v51 }
 0x4f6   :  { %2848 = vmatprep.mubr.f32.mxu0 %v1134_v14  ;;  %3347 = vmatpush3.bf16.msra.mxu0 %v3708_v45  ;;  %v1769_v14 = vld [vmem:[%s4094_s3] sm:$0xff] }
 0x4f7   :  { %3348 = vmatprep.subr.bf16.mxu0 %v3503_v44  ;;  %v3305_v21 = vpack.c.bf16 %v1770_v15, %v1769_v14 }
 0x4f9   :  { %2849 = vmatmul.mubr.f32.gmra.mrb[18].mxu0 %v2736_v59 }
 0x4fa   :  { %3350 = vmatpush3.bf16.msra.mxu0 %v3714_v47  ;;  %3020 = vmatprep.mubr.msk.f32.mxu0 %vm3504_vm2, %v3505_v27 }
 0x4fb   :  { %3351 = vmatprep.subr.bf16.mxu0 %v3503_v44 }
 0x4fe   :  { %3353 = vmatpush3.bf16.msra.mxu0 %v3724_v50 }
 0x4ff   :  { %3354 = vmatprep.subr.bf16.mxu0 %v3503_v44 }
 0x502   :  { %3356 = vmatpush3.bf16.msra.mxu0 %v3743_v8 }
 0x503   :  { %3357 = vmatprep.subr.bf16.mxu0 %v3503_v44 }
 0x506   :  { %3359 = vmatpush3.bf16.msra.mxu0 %v3753_v11 }
 0x507   :  { %3360 = vmatprep.subr.bf16.mxu0 %v3503_v44 }
 0x50a   :  { %3362 = vmatpush3.bf16.msra.mxu0 %v3763_v18 }
 0x50b   :  { %3363 = vmatprep.subr.bf16.mxu0 %v3503_v44 }
 0x50e   :  { %3365 = vmatpush3.bf16.msra.mxu0 %v3773_v23 }
 0x50f   :  { %3366 = vmatprep.subr.bf16.mxu0 %v3503_v44 }
 0x512   :  { %3368 = vmatpush3.bf16.msra.mxu0 %v3783_v26 }
 0x513   :  { %3028 = vmatprep.subr.mxu0 %v3505_v27 }
 0x5c8   :  { %v3930_v10 = vpop.f32.mrb[16].mxu0 }
 0x5c9   :  { %v1530_v12 = vmul.f32 %v3930_v10, %v3930_v10  ;;  %v3934_v17 = vpop.f32.mrb[17].mxu0 }
 0x5ca   :  { %v1450_v19 = vadd.f32 %v3930_v10, %v3934_v17  ;;  %v1529_v24 = vmul.f32 %v3934_v17, %v3934_v17 }
 0x5cc   :  { %v1533_v25 = vadd.f32 %v1530_v12, %v1529_v24  ;;  %v3940_v29 = vpop.f32.mrb[18].mxu0  ;;  %v1776_v12 = vld [vmem:[%s4094_s3 + $0x38] sm:$0xff]  ;;  %v3401_v24 = vld [vmem:[%s4091_s0 + $0x8] sm:$0xff] }
 0x5cd   :  { %v3942_v31 = vpop.f32.mrb[19].mxu0  ;;  %v1532_v36 = vmul.f32 %v3940_v29, %v3940_v29 }
 0x5ce   :  { %v1451_v32 = vadd.f32 %v1450_v19, %v3942_v31  ;;  %v1531_v33 = vmul.f32 %v3942_v31, %v3942_v31  ;;  %v3317_v19 = vpack.c.bf16 %v1776_v12, %v1775_v9 }
 0x5d0   :  { %v1452_v37 = vadd.f32 %v3940_v29, %v1451_v32  ;;  %v1534_v38 = vadd.f32 %v1533_v25, %v1531_v33  ;;  %v3402_v25 = vld [vmem:[%s4091_s0 + $0x10] sm:$0xff]  ;;  %v3403_v32 = vld [vmem:[%s4091_s0 + $0x18] sm:$0xff] }
 0x5d2   :  { %v1453_v5 = vrot.slane %v1452_v37, 4  ;;  %v1535_v39 = vadd.f32 %v1534_v38, %v1532_v36 }
 0x5d4   :  { %v1454_v40 = vadd.f32 %v1453_v5, %v1452_v37  ;;  %v1536_v28 = vrot.slane %v1535_v39, 4 }
 0x5d6   :  { %v1455_v41 = vrot.slane %v1454_v40, 2  ;;  %v1537_v35 = vadd.f32 %v1536_v28, %v1535_v39 }
 0x5d8   :  { %v1456_v42 = vadd.f32 %v1455_v41, %v1454_v40  ;;  %v1538_v34 = vrot.slane %v1537_v35, 2 }
 0x5da   :  { %v1457_v43 = vrot.slane %v1456_v42, 1  ;;  %v1539_v46 = vadd.f32 %v1538_v34, %v1537_v35 }
 0x5dc   :  { %v1458_v30 = vadd.f32 %v1457_v43, %v1456_v42  ;;  %v1540_v48 = vrot.slane %v1539_v46, 1 }
 0x5de   :  { %2884 = vmatmul.mubr.f32.vlgmr.msra.gmra.mrb[12].mxu1 %v1458_v30  ;;  %v1541_v49 = vadd.f32 %v1540_v48, %v1539_v46 }
 0x5df   :  { %3283 = vmatpush3.bf16.msra.mxu1 %v3708_v45  ;;  %2918 = vmatprep.mubr.msk.f32.mxu1 %vm3504_vm2, %v3505_v27 }
 0x5e0   :  { %3284 = vmatprep.subr.bf16.mxu1 %v3503_v44 }
 0x5e3   :  { %3286 = vmatpush3.bf16.msra.mxu1 %v3714_v47 }
 0x5e4   :  { %3287 = vmatprep.subr.bf16.mxu1 %v3503_v44 }
 0x5e7   :  { %3289 = vmatpush3.bf16.msra.mxu1 %v3724_v50 }
 0x5e8   :  { %3290 = vmatprep.subr.bf16.mxu1 %v3503_v44 }
 0x5eb   :  { %3292 = vmatpush3.bf16.msra.mxu1 %v3743_v8 }
 0x5ec   :  { %3293 = vmatprep.subr.bf16.mxu1 %v3503_v44 }
 0x5ef   :  { %3295 = vmatpush3.bf16.msra.mxu1 %v3753_v11 }
 0x5f0   :  { %3296 = vmatprep.subr.bf16.mxu1 %v3503_v44 }
 0x5f3   :  { %3298 = vmatpush3.bf16.msra.mxu1 %v3763_v18 }
 0x5f4   :  { %3299 = vmatprep.subr.bf16.mxu1 %v3503_v44 }
 0x5f7   :  { %3301 = vmatpush3.bf16.msra.mxu1 %v3773_v23 }
 0x5f8   :  { %3302 = vmatprep.subr.bf16.mxu1 %v3503_v44 }
 0x5fb   :  { %3304 = vmatpush3.bf16.msra.mxu1 %v3783_v26 }
 0x5fc   :  { %2921 = vmatprep.subr.mxu1 %v3505_v27 }
 0x5fe   :  { %2919 = vmatmul.mubr.f32.vlgmr.msra.gmra.mrb[14].mxu1 %v1541_v49 }
 0x5ff   :  { %2922 = vmatpush3.msra.mxu1 %v3834_v58  ;;  %2923 = vmatprep.mubr.msk.f32.mxu1 %vm3504_vm2, %v3505_v27 }
 0x600   :  { %2926 = vmatprep.subr.mxu1 %v3505_v27 }
 0x6b1   :  { %v1525_v51 = vpop.f32.mrb[12].mxu1 }
 0x6b2   :  { %v2885_v52 = vpop.f32.mrb[13].mxu1  ;;  %v1612_v53 = vmul.f32 0.001953125, %v1525_v51 }
 0x6b4   :  { %v1614_v55 = vmul.f32 %v1612_v53, %v1612_v53 }
 0x6d1   :  { %v1608_v54 = vpop.f32.mrb[14].mxu1 }
 0x6d2   :  { %v1613_v56 = vmul.f32 0.001953125, %v1608_v54  ;;  %v2920_v57 = vpop.f32.mrb[15].mxu1 }
 0x6d4   :  { %v1615_v59 = vsub.f32 %v1613_v56, %v1614_v55 }
 0x6d6   :  { %v1617_v60 = vadd.f32 1e-05, %v1615_v59 }
 0x6d8   :  { %3396 = vrsqrt.f32 %v1617_v60 }
 0x6e2   :  { %v3397_v16 = vpop.eup %3396 }
 0x6e3   :  { %v1619_v20 = vmul.f32 %v3397_v16, %v1616_v13 }
 0x6e5   :  { %2924 = vmatmul.mubr.msk.f32.vlgmr.msra.gmra.mrb[16].mxu1 %vm806_vm3, %v1619_v20  ;;  %v1621_v0 = vmul.f32 %v1619_v20, %v1612_v53 }
 0x6e6   :  { %2927 = vmatpush3.msra.mxu1 %v3834_v58  ;;  %2928 = vmatprep.mubr.msk.f32.mxu1 %vm3504_vm2, %v3505_v27 }
 0x6e7   :  { %3306 = vmatprep.subr.bf16.mxu1 %v3305_v21  ;;  %v1622_v1 = vsub.f32 %v1620_v61, %v1621_v0 }
 0x6e9   :  { %2929 = vmatmul.mubr.msk.f32.vlgmr.msra.gmra.mrb[18].mxu1 %vm806_vm3, %v1622_v1  ;;  %v2028_v1 = vld [vmem:[%s4101_s10] sm:$0x1]  ;;  %s3506_s10 = smov [#allocation8]  }
 0x6ea   :  { %3308 = vmatpush3.bf16.msra.mxu1 %v3305_v21  ;;  %2947 = vmatprep.mubr.msk.f32.mxu1 %vm312_vm1, %v3400_v4 }
 0x6eb   :  { %3310 = vmatprep.subr.bf16.mxu1 %v3309_v2 }
 0x6ee   :  { %3312 = vmatpush3.bf16.msra.mxu1 %v3309_v2 }
 0x6ef   :  { %3314 = vmatprep.subr.bf16.mxu1 %v3313_v6 }
 0x6f2   :  { %3316 = vmatpush3.bf16.msra.mxu1 %v3313_v6 }
 0x6f3   :  { %3318 = vmatprep.subr.bf16.mxu1 %v3317_v19 }
 0x6f6   :  { %3320 = vmatpush3.bf16.msra.mxu1 %v3317_v19 }
 0x6f7   :  { %3321 = vmatprep.subr.bf16.mxu1 %v3503_v44 }
 0x6f9   :  { %2948 = vmatmul.mubr.msk.f32.vlgmr.msra.gmra.mrb[20].mxu1 %vm312_vm1, %v3401_v24 }
 0x6fa   :  { %2950 = vmatprep.mubr.msk.f32.mxu1 %vm312_vm1, %v3402_v25  ;;  %3323 = vmatpush3.bf16.msra.mxu1 %v3708_v45 }
 0x6fb   :  { %3324 = vmatprep.subr.bf16.mxu1 %v3503_v44 }
 0x6fd   :  { %2951 = vmatmul.mubr.msk.f32.gmra.mrb[22].mxu1 %vm312_vm1, %v3403_v32 }
 0x6fe   :  { %3326 = vmatpush3.bf16.msra.mxu1 %v3714_v47  ;;  %2985 = vmatprep.mubr.msk.f32.mxu1 %vm3504_vm2, %v3505_v27 }
 0x6ff   :  { %3327 = vmatprep.subr.bf16.mxu1 %v3503_v44 }
 0x702   :  { %3329 = vmatpush3.bf16.msra.mxu1 %v3724_v50 }
 0x703   :  { %3330 = vmatprep.subr.bf16.mxu1 %v3503_v44 }
 0x706   :  { %3332 = vmatpush3.bf16.msra.mxu1 %v3743_v8 }
 0x707   :  { %3333 = vmatprep.subr.bf16.mxu1 %v3503_v44 }
 0x70a   :  { %3335 = vmatpush3.bf16.msra.mxu1 %v3753_v11 }
 0x70b   :  { %3336 = vmatprep.subr.bf16.mxu1 %v3503_v44 }
 0x70e   :  { %3338 = vmatpush3.bf16.msra.mxu1 %v3763_v18 }
 0x70f   :  { %3339 = vmatprep.subr.bf16.mxu1 %v3503_v44 }
 0x712   :  { %3341 = vmatpush3.bf16.msra.mxu1 %v3773_v23 }
 0x713   :  { %3342 = vmatprep.subr.bf16.mxu1 %v3503_v44 }
 0x716   :  { %3344 = vmatpush3.bf16.msra.mxu1 %v3783_v26 }
 0x717   :  { %3023 = vmatprep.subr.mxu1 %v3505_v27 }
 0x7b8   :  { %v1692_v45 = vpop.f32.mrb[16].mxu1 }
 0x7b9   :  { %v2184_v47 = vrot.slane %v1692_v45, %v3851_v22  ;;  %v2925_v50 = vpop.f32.mrb[17].mxu1 }
 0x7bb   :  { %v2185_v8 = vmul.f32 %v2184_v47, %v3934_v17  ;;  %v2186_v11 = vmul.f32 %v3930_v10, %v2184_v47  ;;  %v2187_v18 = vmul.f32 %v2184_v47, %v3942_v31  ;;  %v2188_v33 = vmul.f32 %v3940_v29, %v2184_v47 }
 0x7bc   :  { %v1765_v36 = vpop.f32.mrb[18].mxu1 }
 0x7bd   :  { %v2192_v23 = vrot.slane %v1765_v36, %v3851_v22  ;;  %v2930_v44 = vpop.f32.mrb[19].mxu1 }
 0x7bf   :  { %v4048_v37 = vadd.f32 %v2192_v23, %v2185_v8  ;;  %v4050_v26 = vadd.f32 %v2192_v23, %v2186_v11  ;;  %v4052_v38 = vadd.f32 %v2192_v23, %v2187_v18  ;;  %v4054_v5 = vadd.f32 %v2192_v23, %v2188_v33 }
 0x7cc   :  { %v2949_v39 = vpop.f32.mrb[20].mxu1 }
 0x7cd   :  { %v1942_v17 = vmul.f32 %v2949_v39, %v2949_v39  ;;  %v1843_v40 = vpop.f32.mrb[21].mxu1 }
 0x7ce   :  { %v1862_v10 = vadd.f32 %v2949_v39, %v1843_v40  ;;  %v1941_v41 = vmul.f32 %v1843_v40, %v1843_v40 }
 0x7d0   :  { %v1945_v31 = vadd.f32 %v1942_v17, %v1941_v41  ;;  %v2952_v42 = vpop.f32.mrb[22].mxu1 }
 0x7d1   :  { %v1853_v29 = vpop.f32.mrb[23].mxu1  ;;  %v1944_v28 = vmul.f32 %v2952_v42, %v2952_v42 }
 0x7d2   :  { %v1863_v43 = vadd.f32 %v1862_v10, %v1853_v29  ;;  %v1943_v30 = vmul.f32 %v1853_v29, %v1853_v29 }
 0x7d4   :  { %v1864_v35 = vadd.f32 %v2952_v42, %v1863_v43  ;;  %v1946_v34 = vadd.f32 %v1945_v31, %v1943_v30 }
 0x7d6   :  { %v1865_v46 = vrot.slane %v1864_v35, 4  ;;  %v1947_v48 = vadd.f32 %v1946_v34, %v1944_v28 }
 0x7d8   :  { %v1866_v49 = vadd.f32 %v1865_v46, %v1864_v35  ;;  %v1948_v51 = vrot.slane %v1947_v48, 4 }
 0x7da   :  { %v1867_v52 = vrot.slane %v1866_v49, 2  ;;  %v1949_v53 = vadd.f32 %v1948_v51, %v1947_v48 }
 0x7dc   :  { %v1868_v54 = vadd.f32 %v1867_v52, %v1866_v49  ;;  %v1950_v55 = vrot.slane %v1949_v53, 2 }
 0x7de   :  { %v1869_v56 = vrot.slane %v1868_v54, 1  ;;  %v1951_v57 = vadd.f32 %v1950_v55, %v1949_v53 }
 0x7e0   :  { %v1870_v59 = vadd.f32 %v1869_v56, %v1868_v54  ;;  %v1952_v60 = vrot.slane %v1951_v57, 1 }
 0x7e2   :  { %2986 = vmatmul.mubr.f32.vlgmr.msra.gmra.mrb[24].mxu1 %v1870_v59  ;;  %v1953_v13 = vadd.f32 %v1952_v60, %v1951_v57 }
 0x7e3   :  { %3024 = vmatpush3.msra.mxu1 %v3834_v58  ;;  %3025 = vmatprep.mubr.msk.f32.mxu1 %vm3504_vm2, %v3505_v27 }
 0x7e4   :  { %3021 = vmatmul.mubr.f32.vlgmr.msra.gmra.mrb[20].mxu0 %v1953_v13 }
 0x7e5   :  { %3029 = vmatpush3.msra.mxu0 %v3834_v58  ;;  %3030 = vmatprep.mubr.msk.f32.mxu0 %vm3504_vm2, %v3505_v27  ;;  %v2032_v27 = vld [vmem:[%s4102_s11] sm:$0x1]  ;;  %s2230_s11 = sshll.u32 %s3506_s10, 4  ;;  %s2231_s11 = int_to_ptr.vmem [resolvable:$true] %s2230_s11 }
 0x7e6   :  { %s3470_s2 = scalar_lea.vmem %s2231_s11, 512  ;;  %p3475_p11 = scmp.lt.s32.totalorder %s2231_s11, %s2231_s11 }
 0x7e7   :  { %p3471_p10 = scmp.ne.s32.totalorder %s2231_s11, %s3470_s2  ;;  %p3476_p12 = scmp.lt.s32.totalorder %s3470_s2, %s3470_s2 }
 0x7e9   :  { %p3477_p13 = por %p3476_p12, %p3475_p11 }
 0x7eb   :  { %p3478_p0 = pnand %p3477_p13, %p3471_p10 }
 0x8b5   :  { %v1937_v14 = vpop.f32.mrb[24].mxu1 }
 0x8b6   :  { %v2024_v15 = vmul.f32 0.001953125, %v1937_v14  ;;  %v2987_v16 = vpop.f32.mrb[25].mxu1 }
 0x8b7   :  { %v2020_v20 = vpop.f32.mrb[20].mxu0 }
 0x8b8   :  { %v2026_v21 = vmul.f32 %v2024_v15, %v2024_v15  ;;  %v2025_v61 = vmul.f32 0.001953125, %v2020_v20  ;;  %v3022_v62 = vpop.f32.mrb[21].mxu0 }
 0x8ba   :  { %v2027_v63 = vsub.f32 %v2025_v61, %v2026_v21 }
 0x8bc   :  { %v2029_v0 = vadd.f32 1e-05, %v2027_v63 }
 0x8be   :  { %3398 = vrsqrt.f32 %v2029_v0 }
 0x8c8   :  { %v3399_v2 = vpop.eup %3398 }
 0x8c9   :  { %v2031_v3 = vmul.f32 %v3399_v2, %v2028_v1 }
 0x8cb   :  { %3026 = vmatmul.mubr.msk.f32.vlgmr.msra.gmra.mrb[26].mxu1 %vm806_vm3, %v2031_v3  ;;  %v2033_v58 = vmul.f32 %v2031_v3, %v2024_v15 }
 0x8cd   :  { %v2034_v7 = vsub.f32 %v2032_v27, %v2033_v58 }
 0x8cf   :  { %3031 = vmatmul.mubr.msk.f32.vlgmr.msra.gmra.mrb[22].mxu0 %vm806_vm3, %v2034_v7 }
 0x99e   :  { %v2104_v4 = vpop.f32.mrb[26].mxu1 }
 0x99f   :  { %v2200_v6 = vrot.slane %v2104_v4, %v3851_v22  ;;  %v3027_v9 = vpop.f32.mrb[27].mxu1 }
 0x9a1   :  { %v2201_v12 = vmul.f32 %v2200_v6, %v1843_v40  ;;  %v2202_v19 = vmul.f32 %v2949_v39, %v2200_v6  ;;  %v2203_v24 = vmul.f32 %v2200_v6, %v1853_v29  ;;  %v2204_v25 = vmul.f32 %v2952_v42, %v2200_v6 }
 0x9a2   :  { %v2177_v32 = vpop.f32.mrb[22].mxu0 }
 0x9a3   :  { %v2208_v45 = vrot.slane %v2177_v32, %v3851_v22  ;;  %v3032_v47 = vpop.f32.mrb[23].mxu0 }
 0x9a5   :  { %v2209_v50 = vadd.f32 %v2208_v45, %v2201_v12  ;;  %v2210_v8 = vadd.f32 %v2208_v45, %v2202_v19  ;;  %v2211_v11 = vadd.f32 %v2208_v45, %v2203_v24  ;;  %v2212_v18 = vadd.f32 %v2208_v45, %v2204_v25 }
 0x9a7   :  { %v2213_v33 = vadd.f32 %v2209_v50, %v4048_v37  ;;  %v2214_v36 = vadd.f32 %v2210_v8, %v4050_v26  ;;  %v2215_v23 = vadd.f32 %v2211_v11, %v4052_v38  ;;  %v2216_v44 = vadd.f32 %v2212_v18, %v4054_v5 }
 0x9a9   :  { %v2217_v39 = vmax.f32 %v2213_v33, 0.0  ;;  %v2218_v17 = vmax.f32 %v2214_v36, 0.0  ;;  %v2219_v40 = vmax.f32 %v2215_v23, 0.0  ;;  %v2220_v10 = vmax.f32 %v2216_v44, 0.0 }
 0x9ab   :  { %2221 = vst [vmem:[#allocation8] sm:$0xff] %v2217_v39  ;;  %2222 = vst [vmem:[#allocation8 + $0x8] sm:$0xff] %v2218_v17 }
 0x9ac   :  { %2223 = vst [vmem:[#allocation8 + $0x10] sm:$0xff] %v2219_v40  ;;  %2224 = vst [vmem:[#allocation8 + $0x18] sm:$0xff] %v2220_v10 }
 0x9ad   :  { %3481 = shalt.err (!%p3478_p0)
}
 0x9ae   :  { %s3482_s27 = scalar_lea.hbm %s4105_s14, 512 }
 0x9af   :  { %p3483_p1 = scmp.ne.s32.totalorder %s4105_s14, %s3482_s27  ;;  %p3486_p2 = scmp.lt.u32.totalorder %s3482_s27, %s4105_s14 }
 0x9b1   :  { %p3488_p3 = pnand %p3486_p2, %p3483_p1 }
 0x9b3   :  { %3491 = shalt.err (!%p3488_p3)
}
 0x9b4   :  { %2236 = dma.vmem_to_hbm [thread:$0]  %s2231_s11, 512, %s4105_s14, [#allocation4], %s3500_s25, %s3500_s25, %s3501_s26  }
 0x9b5   :  { %3496 = dma.done.wait [#allocation4], 512  }
 0x9b6   :  { %3497 = vsyncadd [#allocation4], 4294966784 }
 0x9b7   :  { %2240 = vsyncpa [#allocation3], 1 }
 0x9b8   :  { %2241 = vsyncpa [#allocation6], 1 }
 0x9b9   :  { %2242 = vsyncpa [#allocation4], 1 }

</bundles_post_ra>
